<compile_context>
chip_gen: v5e
topology: v5e:2x2
jax: 0.10.0
libtpu: 0.0.40
codegen_flags: <defaults>
</compile_context>

<pallas_src>
import functools

import jax
import jax.numpy as jnp
from jax.experimental import pallas as pl
from jax.experimental.pallas import tpu as pltpu

_LN_EPS = 1e-5  # torch.nn.LayerNorm default

# rows of the packed (n_layer, 10, D) f32 "vector" tensor
_VEC_ORDER = ("aln_w", "aln_b", "bo", "cln_w", "cln_b", "cbq", "cbo",
              "mln_w", "mln_b", "b2")
_VEC_IDX = {k: i for i, k in enumerate(_VEC_ORDER)}

_WEIGHT_ORDER = ("w_qkv", "b_qkv", "w_o", "cw_q", "cw_kv", "b_ckv", "cw_o",
                 "w1", "b1", "w2", "vecs")


# ---------------------------------------------------------------------------
# in-kernel math helpers
# ---------------------------------------------------------------------------
def _layer_norm(x, w, b):
    mu = jnp.mean(x, axis=-1, keepdims=True)
    var = jnp.mean(jnp.square(x - mu), axis=-1, keepdims=True)
    return (x - mu) * jax.lax.rsqrt(var + _LN_EPS) * w + b


def _softmax(x):
    m = jnp.max(x, axis=-1, keepdims=True)
    e = jnp.exp(x - m)
    # approx reciprocal runs on the (otherwise idle) EUP slot
    return e * pl.reciprocal(jnp.sum(e, axis=-1, keepdims=True), approx=True)


def _gelu(x):
    # tanh-approx GELU: one EUP tanh instead of ~10 VPU mul/adds per element.
    c = 0.7978845608028654  # sqrt(2/pi)
    return 0.5 * x * (1.0 + jnp.tanh(c * (x + 0.044715 * x * x * x)))


def _mha_to_ctx(q, kv, mask, ctx_ref, *, n_head, n_batch, t_len, s_len):
    """Multi-head attention core for all batch elements of one layer.

    q   : (B*T, D)  bf16 queries  (bias + dh^-0.5 scale already folded in)
    kv  : (B*S, 2D) bf16 fused [K | V] (biases already added)
    mask: (T, T) f32 additive mask or None
    Writes each head's (T, dh) context into ctx_ref (B*T, D) bf16 at its lane
    offset; the caller applies the full (D, D) output projection in one matmul.
    """
    d = ctx_ref.shape[-1]
    dh = d // n_head
    contract_minor = (((1,), (1,)), ((), ()))  # a @ b.T without materializing b.T
    for b in range(n_batch):          # static unroll (B is small)
        q_b = q[b * t_len:(b + 1) * t_len, :]
        kv_b = kv[b * s_len:(b + 1) * s_len, :]
        for h in range(n_head):       # static unroll over heads
            lo, hi = h * dh, (h + 1) * dh
            logits = jax.lax.dot_general(
                q_b[:, lo:hi], kv_b[:, lo:hi], contract_minor,
                preferred_element_type=jnp.float32)
            if mask is not None:
                logits = logits + mask
            p = _softmax(logits).astype(jnp.bfloat16)
            ctx = jnp.dot(p, kv_b[:, d + lo:d + hi],
                          preferred_element_type=jnp.float32)
            ctx_ref[b * t_len:(b + 1) * t_len, lo:hi] = ctx.astype(jnp.bfloat16)


# ---------------------------------------------------------------------------
# Pallas kernel: whole decoder stack, grid = (layer,)
# ---------------------------------------------------------------------------
def _decoder_stack_kernel(x_ref, xa_ref, mask_ref,
                          w_qkv_ref, b_qkv_ref, w_o_ref,
                          cw_q_ref, cw_kv_ref, b_ckv_ref, cw_o_ref,
                          w1_ref, b1_ref, w2_ref, vec_ref,
                          out_ref, ctx_ref, *, n_head, n_batch, t_len, s_len):
    d = x_ref.shape[-1]
    layer = pl.program_id(0)

    # Layer 0: pull the residual stream into the (layer-resident) output block.
    @pl.when(layer == 0)
    def _():
        out_ref[...] = x_ref[...]

    mask = mask_ref[...]   # (T, T) f32 additive causal mask

    def row(name):
        i = _VEC_IDX[name]
        return vec_ref[i:i + 1, :]   # (1, D) f32

    x = out_ref[...]       # (B*T, D) f32 residual stream, carried across layers

    # ---------------- masked self-attention ----------------
    h = _layer_norm(x, row("aln_w"), row("aln_b")).astype(jnp.bfloat16)
    qkv = (jnp.dot(h, w_qkv_ref[...], preferred_element_type=jnp.float32)
           + b_qkv_ref[...]).astype(jnp.bfloat16)      # dh^-0.5 pre-folded into Q
    _mha_to_ctx(qkv[:, :d], qkv[:, d:], mask, ctx_ref,
                n_head=n_head, n_batch=n_batch, t_len=t_len, s_len=t_len)
    attn = jnp.dot(ctx_ref[...], w_o_ref[...], preferred_element_type=jnp.float32)
    out_ref[...] = x + attn + row("bo")     # stage residual back (bounds live ranges)
    x = out_ref[...]

    # ---------------- cross-attention over audio features ----------------
    # TODO(synk): xa @ cw_kv is constant across decode steps; cache it per audio
    # segment outside this kernel for autoregressive decoding.
    h = _layer_norm(x, row("cln_w"), row("cln_b")).astype(jnp.bfloat16)
    q = (jnp.dot(h, cw_q_ref[...], preferred_element_type=jnp.float32)
         + row("cbq")).astype(jnp.bfloat16)            # scale pre-folded
    kv = (jnp.dot(xa_ref[...], cw_kv_ref[...], preferred_element_type=jnp.float32)
          + b_ckv_ref[...]).astype(jnp.bfloat16)       # drop the f32 copy immediately
    _mha_to_ctx(q, kv, None, ctx_ref,
                n_head=n_head, n_batch=n_batch, t_len=t_len, s_len=s_len)
    attn = jnp.dot(ctx_ref[...], cw_o_ref[...], preferred_element_type=jnp.float32)
    out_ref[...] = x + attn + row("cbo")
    x = out_ref[...]

    # ---------------- MLP ----------------
    h = _layer_norm(x, row("mln_w"), row("mln_b")).astype(jnp.bfloat16)
    t = jnp.dot(h, w1_ref[...], preferred_element_type=jnp.float32) + b1_ref[...]
    t = _gelu(t)
    t = jnp.dot(t.astype(jnp.bfloat16), w2_ref[...],
                preferred_element_type=jnp.float32) + row("b2")
    out_ref[...] = x + t


# ---------------------------------------------------------------------------
# wrapper: pack per-layer params, build specs, call the fused kernel
# ---------------------------------------------------------------------------
def _pack_blocks(blocks, n_head):
    d = blocks[0]["wq"].shape[0]
    dh = d // n_head
    scale = float(dh) ** -0.5          # attention scale folded into Q weights/biases
    bf16 = jnp.bfloat16

    def stack(fn, dtype=None):
        a = jnp.stack([fn(p) for p in blocks], axis=0)
        return a.astype(dtype) if dtype is not None else a

    def vecs(p):
        rows = []
        for k in _VEC_ORDER:
            v = p[k] * scale if k == "cbq" else p[k]   # cross-attn Q bias scaled too
            rows.append(v)
        return jnp.concatenate(rows, 0)

    return dict(
        w_qkv=stack(lambda p: jnp.concatenate(
            [p["wq"] * scale, p["wk"], p["wv"]], 1), bf16),
        b_qkv=stack(lambda p: jnp.concatenate(
            [p["bq"] * scale, jnp.zeros_like(p["bq"]), p["bv"]], 1)),   # K bias = 0
        w_o=stack(lambda p: p["wo"], bf16),            # unsplit (D, D)
        cw_q=stack(lambda p: p["cwq"] * scale, bf16),
        cw_kv=stack(lambda p: jnp.concatenate([p["cwk"], p["cwv"]], 1), bf16),
        b_ckv=stack(lambda p: jnp.concatenate(
            [jnp.zeros_like(p["cbv"]), p["cbv"]], 1)),                  # K bias = 0
        cw_o=stack(lambda p: p["cwo"], bf16),
        w1=stack(lambda p: p["w1"], bf16),
        b1=stack(lambda p: p["b1"]),
        w2=stack(lambda p: p["w2"], bf16),
        vecs=stack(vecs),
    )


def _estimate_cost(B, T, S, D, L, n_head, x_flat, xa_flat, mask, weights):
    # projections / MLP: 2*D*D*(14*T + 2*S) flops per batch element per layer
    matmul_flops = 2 * B * D * D * (14 * T + 2 * S)
    attn_flops = 4 * B * T * D * (T + S)              # logits + ctx, all heads
    flops = L * (matmul_flops + attn_flops)
    transcendentals = L * B * (n_head * T * (T + S) + 4 * T * D)
    weight_bytes = sum(int(w.size) * w.dtype.itemsize for w in weights)
    act_bytes = 2 * x_flat.nbytes + xa_flat.nbytes + mask.nbytes
    return pl.CostEstimate(flops=int(flops),
                           transcendentals=int(transcendentals),
                           bytes_accessed=int(weight_bytes + act_bytes))


def _vmem_limit_bytes(weights, act_bytes, scratch_bytes):
    L = weights[0].shape[0]
    per_layer_w = sum(int(w.size) * w.dtype.itemsize for w in weights) // L
    # double-buffered per-layer weights + (conservatively doubled) activation
    # blocks + scratch + headroom, capped below the physical VMEM of this chip.
    need = 2 * per_layer_w + 2 * act_bytes + scratch_bytes + (16 << 20)
    try:
        cap = int(getattr(pltpu.get_tpu_info(), "vmem_capacity_bytes", 64 << 20))
    except Exception:  # pragma: no cover - defensive, interpreter/older runtimes
        cap = 64 << 20
    return int(min(max(need, 32 << 20), int(cap * 0.9)))


def text_decoder_engine(x, xa, mask, blocks, n_head):
    """Pallas equivalent of `_TextDecoderEngine.forward`: all decoder layers
    fused into a single pallas_call with grid (layer,); batch is in-block."""
    B, T, D = x.shape
    S = xa.shape[1]
    L = len(blocks)
    assert D % n_head == 0

    packed = _pack_blocks(blocks, n_head)
    weights = [packed[k] for k in _WEIGHT_ORDER]

    x_flat = x.reshape(B * T, D).astype(jnp.float32)
    xa_flat = xa.reshape(B * S, D).astype(jnp.bfloat16)
    mask_f = mask.astype(jnp.float32)

    in_specs = [
        pl.BlockSpec((B * T, D), lambda l: (0, 0)),   # x  (f32, aliased to output)
        pl.BlockSpec((B * S, D), lambda l: (0, 0)),   # xa (bf16)
        pl.BlockSpec((T, T), lambda l: (0, 0)),       # mask (shared)
    ] + [pl.BlockSpec((None,) + w.shape[1:], lambda l: (l, 0, 0)) for w in weights]

    grid_spec = pltpu.PrefetchScalarGridSpec(
        num_scalar_prefetch=0,
        grid=(L,),                      # layer axis only: x stays VMEM-resident
        in_specs=in_specs,
        out_specs=pl.BlockSpec((B * T, D), lambda l: (0, 0)),
        scratch_shapes=[pltpu.VMEM((B * T, D), jnp.bfloat16)],   # head-ctx staging
    )

    act_bytes = 2 * x_flat.nbytes + xa_flat.nbytes + mask_f.nbytes
    scratch_bytes = B * T * D * 2
    kernel = functools.partial(_decoder_stack_kernel, n_head=n_head,
                               n_batch=B, t_len=T, s_len=S)
    out_flat = pl.pallas_call(
        kernel,
        grid_spec=grid_spec,
        out_shape=jax.ShapeDtypeStruct((B * T, D), jnp.float32),
        input_output_aliases={0: 0},    # residual stream reuses x's HBM buffer
        cost_estimate=_estimate_cost(B, T, S, D, L, n_head,
                                     x_flat, xa_flat, mask_f, weights),
        compiler_params=pltpu.CompilerParams(
            dimension_semantics=("arbitrary",),   # output block revisited per layer
            vmem_limit_bytes=_vmem_limit_bytes(weights, act_bytes, scratch_bytes),
        ),
    )(x_flat, xa_flat, mask_f, *weights)
    return out_flat.reshape(B, T, D)


# ---------------------------------------------------------------------------
# deterministic synthetic parameters + pure-JAX f32 reference (verification)
# ---------------------------------------------------------------------------
def init_block_params(key, n_state):
    n_mlp = 4 * n_state
    ks = iter(jax.random.split(key, 32))

    def w(din, dout, scale=0.05):
        return scale * jax.random.normal(next(ks), (din, dout), jnp.float32)

    def vec(d, scale=0.05, offset=0.0):
        return offset + scale * jax.random.normal(next(ks), (1, d), jnp.float32)

    return dict(
        aln_w=vec(n_state, offset=1.0), aln_b=vec(n_state),
        wq=w(n_state, n_state), bq=vec(n_state),
        wk=w(n_state, n_state),
        wv=w(n_state, n_state), bv=vec(n_state),
        wo=w(n_state, n_state), bo=vec(n_state),
        cln_w=vec(n_state, offset=1.0), cln_b=vec(n_state),
        cwq=w(n_state, n_state), cbq=vec(n_state),
        cwk=w(n_state, n_state),
        cwv=w(n_state, n_state), cbv=vec(n_state),
        cwo=w(n_state, n_state), cbo=vec(n_state),
        mln_w=vec(n_state, offset=1.0), mln_b=vec(n_state),
        w1=w(n_state, n_mlp), b1=vec(n_mlp),
        w2=w(n_mlp, n_state), b2=vec(n_state),
    )


def _ref_block(x, xa, mask, p, n_head):
    def ln(t, w, b):
        mu = t.mean(-1, keepdims=True)
        var = ((t - mu) ** 2).mean(-1, keepdims=True)
        return (t - mu) / jnp.sqrt(var + _LN_EPS) * w + b

    def mha(xq, xkv, wq, bq, wk, wv, bv, wo, bo, m):
        B, T, D = xq.shape
        S = xkv.shape[1]
        dh = D // n_head
        scale = dh ** -0.25
        q = (xq @ wq + bq).reshape(B, T, n_head, dh).transpose(0, 2, 1, 3) * scale
        k = (xkv @ wk).reshape(B, S, n_head, dh).transpose(0, 2, 1, 3) * scale
        v = (xkv @ wv + bv).reshape(B, S, n_head, dh).transpose(0, 2, 1, 3)
        logits = jnp.einsum("bhqd,bhkd->bhqk", q, k)
        if m is not None:
            logits = logits + m
        w = jax.nn.softmax(logits, axis=-1)
        o = jnp.einsum("bhqk,bhkd->bhqd", w, v).transpose(0, 2, 1, 3).reshape(B, T, D)
        return o @ wo + bo

    h = ln(x, p["aln_w"], p["aln_b"])
    x = x + mha(h, h, p["wq"], p["bq"], p["wk"], p["wv"], p["bv"], p["wo"], p["bo"], mask)
    h = ln(x, p["cln_w"], p["cln_b"])
    x = x + mha(h, xa, p["cwq"], p["cbq"], p["cwk"], p["cwv"], p["cbv"], p["cwo"], p["cbo"], None)
    h = ln(x, p["mln_w"], p["mln_b"])
    h = jax.nn.gelu(h @ p["w1"] + p["b1"], approximate=False)
    return x + (h @ p["w2"] + p["b2"])


if __name__ == "__main__":
    B, T, S, D, H, L = 2, 8, 16, 32, 4, 2  # batch, text len, audio len, d_model, heads, layers

    key = jax.random.PRNGKey(0)
    kx, ka, kp = jax.random.split(key, 3)
    x = jax.random.normal(kx, (B, T, D), jnp.float32)
    xa = jax.random.normal(ka, (B, S, D), jnp.float32)
    # Whisper causal mask: -inf strictly above the diagonal, added to the logits.
    mask = jnp.triu(jnp.full((T, T), -jnp.inf, jnp.float32), k=1)

    blocks = [init_block_params(k, D) for k in jax.random.split(kp, L)]

    out = text_decoder_engine(x, xa, mask, blocks, H)
    out = jax.block_until_ready(out)

    # pure-JAX f32 reference check (kernel runs bf16 matmuls + tanh-GELU, so
    # compare with a tolerance that covers the intentional low-precision path)
    ref = x
    for p in blocks:
        ref = _ref_block(ref, xa, mask, p, H)
    assert out.shape == (B, T, D)
    max_err = float(jnp.max(jnp.abs(out - ref)))
    assert bool(jnp.allclose(out, ref, rtol=2e-2, atol=2e-2)), max_err

    print("KERNEL_OK")
</pallas_src>

<mosaic_0001>
module attributes {stable_mosaic.version = 11 : i64} {
  func.func @_decoder_stack_kernel(%arg0: i32, %arg1: memref<16x32xf32, #tpu.memory_space<vmem>>, %arg2: memref<32x32xbf16, #tpu.memory_space<vmem>>, %arg3: memref<8x8xf32, #tpu.memory_space<vmem>>, %arg4: memref<1x32x96xbf16, #tpu.memory_space<vmem>>, %arg5: memref<1x1x96xf32, #tpu.memory_space<vmem>>, %arg6: memref<1x32x32xbf16, #tpu.memory_space<vmem>>, %arg7: memref<1x32x32xbf16, #tpu.memory_space<vmem>>, %arg8: memref<1x32x64xbf16, #tpu.memory_space<vmem>>, %arg9: memref<1x1x64xf32, #tpu.memory_space<vmem>>, %arg10: memref<1x32x32xbf16, #tpu.memory_space<vmem>>, %arg11: memref<1x32x128xbf16, #tpu.memory_space<vmem>>, %arg12: memref<1x1x128xf32, #tpu.memory_space<vmem>>, %arg13: memref<1x128x32xbf16, #tpu.memory_space<vmem>>, %arg14: memref<1x10x32xf32, #tpu.memory_space<vmem>>, %arg15: memref<16x32xf32, #tpu.memory_space<vmem>>, %arg16: memref<16x32xbf16, #tpu.memory_space<vmem>>) attributes {dimension_semantics = [#tpu.dimension_semantics<arbitrary>], iteration_bounds = array<i64: 2>, scalar_prefetch = 0 : i64, scratch_operands = 1 : i64, tpu.core_type = #tpu.core_type<tc>, window_params = [{pipeline_mode = #tpu.pipeline_mode<synchronous>, transform_indices = @transform_0, window_bounds = array<i64: 16, 32>}, {pipeline_mode = #tpu.pipeline_mode<synchronous>, transform_indices = @transform_1, window_bounds = array<i64: 32, 32>}, {pipeline_mode = #tpu.pipeline_mode<synchronous>, transform_indices = @transform_2, window_bounds = array<i64: 8, 8>}, {transform_indices = @transform_3, window_bounds = array<i64: 1, 32, 96>}, {transform_indices = @transform_4, window_bounds = array<i64: 1, 1, 96>}, {transform_indices = @transform_5, window_bounds = array<i64: 1, 32, 32>}, {transform_indices = @transform_6, window_bounds = array<i64: 1, 32, 32>}, {transform_indices = @transform_7, window_bounds = array<i64: 1, 32, 64>}, {transform_indices = @transform_8, window_bounds = array<i64: 1, 1, 64>}, {transform_indices = @transform_9, window_bounds = array<i64: 1, 32, 32>}, {transform_indices = @transform_10, window_bounds = array<i64: 1, 32, 128>}, {transform_indices = @transform_11, window_bounds = array<i64: 1, 1, 128>}, {transform_indices = @transform_12, window_bounds = array<i64: 1, 128, 32>}, {transform_indices = @transform_13, window_bounds = array<i64: 1, 10, 32>}, {pipeline_mode = #tpu.pipeline_mode<synchronous>, transform_indices = @transform_14, window_bounds = array<i64: 16, 32>}]} {
    %c0_i32 = arith.constant 0 : i32
    %0 = arith.cmpi eq, %arg0, %c0_i32 : i32
    %1 = arith.extui %0 : i1 to i32
    %c0_i32_0 = arith.constant 0 : i32
    %2 = arith.cmpi ne, %1, %c0_i32_0 : i32
    scf.if %2 {
      %c0_190 = arith.constant 0 : index
      %c0_191 = arith.constant 0 : index
      %469 = vector.load %arg1[%c0_190, %c0_191] : memref<16x32xf32, #tpu.memory_space<vmem>>, vector<16x32xf32>
      %c0_192 = arith.constant 0 : index
      %c0_193 = arith.constant 0 : index
      %470 = vector.load %arg15[%c0_192, %c0_193] : memref<16x32xf32, #tpu.memory_space<vmem>>, vector<16x32xf32>
      tpu.vector_store %arg15[%c0_192, %c0_193], %469 {strides = array<i32>} : memref<16x32xf32, #tpu.memory_space<vmem>>, vector<16x32xf32>,
    } else {
    }
    %c0 = arith.constant 0 : index
    %c0_1 = arith.constant 0 : index
    %3 = vector.load %arg3[%c0, %c0_1] : memref<8x8xf32, #tpu.memory_space<vmem>>, vector<8x8xf32>
    %c0_2 = arith.constant 0 : index
    %c0_3 = arith.constant 0 : index
    %4 = vector.load %arg15[%c0_2, %c0_3] : memref<16x32xf32, #tpu.memory_space<vmem>>, vector<16x32xf32>
    %c0_4 = arith.constant 0 : index
    %c0_5 = arith.constant 0 : index
    %c0_6 = arith.constant 0 : index
    %5 = vector.load %arg14[%c0_4, %c0_5, %c0_6] : memref<1x10x32xf32, #tpu.memory_space<vmem>>, vector<1x1x32xf32>
    %6 = vector.shape_cast %5 : vector<1x1x32xf32> to vector<1x32xf32>
    %c0_7 = arith.constant 0 : index
    %c1 = arith.constant 1 : index
    %c0_8 = arith.constant 0 : index
    %7 = vector.load %arg14[%c0_7, %c1, %c0_8] : memref<1x10x32xf32, #tpu.memory_space<vmem>>, vector<1x1x32xf32>
    %8 = vector.shape_cast %7 : vector<1x1x32xf32> to vector<1x32xf32>
    %cst = arith.constant dense<0.000000e+00> : vector<16xf32>
    %9 = vector.multi_reduction <add>, %4, %cst [1] : vector<16x32xf32> to vector<16xf32>
    %10 = vector.shape_cast %9 : vector<16xf32> to vector<16x1xf32>
    %cst_9 = arith.constant 3.200000e+01 : f32
    %11 = vector.broadcast %cst_9 : f32 to vector<16x1xf32>
    %12 = arith.divf %10, %11 : vector<16x1xf32>
    %13 = vector.broadcast %12 : vector<16x1xf32> to vector<16x32xf32>
    %14 = arith.subf %4, %13 : vector<16x32xf32>
    %15 = arith.mulf %14, %14 : vector<16x32xf32>
    %cst_10 = arith.constant dense<0.000000e+00> : vector<16xf32>
    %16 = vector.multi_reduction <add>, %15, %cst_10 [1] : vector<16x32xf32> to vector<16xf32>
    %17 = vector.shape_cast %16 : vector<16xf32> to vector<16x1xf32>
    %cst_11 = arith.constant 3.200000e+01 : f32
    %18 = vector.broadcast %cst_11 : f32 to vector<16x1xf32>
    %19 = arith.divf %17, %18 : vector<16x1xf32>
    %20 = vector.broadcast %12 : vector<16x1xf32> to vector<16x32xf32>
    %21 = arith.subf %4, %20 : vector<16x32xf32>
    %cst_12 = arith.constant 9.99999974E-6 : f32
    %22 = vector.broadcast %cst_12 : f32 to vector<16x1xf32>
    %23 = arith.addf %19, %22 : vector<16x1xf32>
    %24 = math.rsqrt %23 : vector<16x1xf32>
    %25 = vector.broadcast %24 : vector<16x1xf32> to vector<16x32xf32>
    %26 = arith.mulf %21, %25 : vector<16x32xf32>
    %27 = vector.broadcast %6 : vector<1x32xf32> to vector<16x32xf32>
    %28 = arith.mulf %26, %27 : vector<16x32xf32>
    %29 = vector.broadcast %8 : vector<1x32xf32> to vector<16x32xf32>
    %30 = arith.addf %28, %29 : vector<16x32xf32>
    %31 = arith.truncf %30 : vector<16x32xf32> to vector<16x32xbf16>
    %c0_13 = arith.constant 0 : index
    %c0_14 = arith.constant 0 : index
    %c0_15 = arith.constant 0 : index
    %32 = vector.load %arg4[%c0_13, %c0_14, %c0_15] : memref<1x32x96xbf16, #tpu.memory_space<vmem>>, vector<1x32x96xbf16>
    %33 = vector.shape_cast %32 : vector<1x32x96xbf16> to vector<32x96xbf16>
    %cst_16 = arith.constant dense<0.000000e+00> : vector<16x96xf32>
    %34 = tpu.matmul %31, %33, %cst_16 {dimension_numbers = #tpu.dot_dimension_numbers<[1], [0], [0], [1], [0, 0, 1, 1], [], []>} : vector<16x32xbf16>, vector<32x96xbf16>, vector<16x96xf32> -> vector<16x96xf32>
    %c0_17 = arith.constant 0 : index
    %c0_18 = arith.constant 0 : index
    %c0_19 = arith.constant 0 : index
    %35 = vector.load %arg5[%c0_17, %c0_18, %c0_19] : memref<1x1x96xf32, #tpu.memory_space<vmem>>, vector<1x1x96xf32>
    %36 = vector.shape_cast %35 : vector<1x1x96xf32> to vector<1x96xf32>
    %37 = vector.broadcast %36 : vector<1x96xf32> to vector<16x96xf32>
    %38 = arith.addf %34, %37 : vector<16x96xf32>
    %39 = arith.truncf %38 : vector<16x96xf32> to vector<16x96xbf16>
    %40 = vector.extract_strided_slice %39 {offsets = [0, 0], sizes = [16, 32], strides = [1, 1]} : vector<16x96xbf16> to vector<16x32xbf16>
    %41 = vector.extract_strided_slice %39 {offsets = [0, 32], sizes = [16, 64], strides = [1, 1]} : vector<16x96xbf16> to vector<16x64xbf16>
    %42 = vector.extract_strided_slice %40 {offsets = [0, 0], sizes = [8, 32], strides = [1, 1]} : vector<16x32xbf16> to vector<8x32xbf16>
    %43 = vector.extract_strided_slice %41 {offsets = [0, 0], sizes = [8, 64], strides = [1, 1]} : vector<16x64xbf16> to vector<8x64xbf16>
    %44 = vector.extract_strided_slice %42 {offsets = [0, 0], sizes = [8, 8], strides = [1, 1]} : vector<8x32xbf16> to vector<8x8xbf16>
    %45 = vector.extract_strided_slice %43 {offsets = [0, 0], sizes = [8, 8], strides = [1, 1]} : vector<8x64xbf16> to vector<8x8xbf16>
    %cst_20 = arith.constant dense<0.000000e+00> : vector<8x8xf32>
    %46 = tpu.matmul %44, %45, %cst_20 {dimension_numbers = #tpu.dot_dimension_numbers<[1], [1], [0], [0], [0, 0, 1, 0], [], []>} : vector<8x8xbf16>, vector<8x8xbf16>, vector<8x8xf32> -> vector<8x8xf32>
    %47 = arith.addf %46, %3 : vector<8x8xf32>
    %cst_21 = arith.constant dense<0xFF800000> : vector<8xf32>
    %48 = vector.multi_reduction <maximumf>, %47, %cst_21 [1] : vector<8x8xf32> to vector<8xf32>
    %49 = vector.shape_cast %48 : vector<8xf32> to vector<8x1xf32>
    %50 = vector.broadcast %49 : vector<8x1xf32> to vector<8x8xf32>
    %51 = arith.subf %47, %50 : vector<8x8xf32>
    %52 = math.exp %51 : vector<8x8xf32>
    %cst_22 = arith.constant dense<0.000000e+00> : vector<8xf32>
    %53 = vector.multi_reduction <add>, %52, %cst_22 [1] : vector<8x8xf32> to vector<8xf32>
    %54 = vector.shape_cast %53 : vector<8xf32> to vector<8x1xf32>
    %55 = tpu.reciprocal %54 {approx = true} : vector<8x1xf32> -> vector<8x1xf32>
    %56 = vector.broadcast %55 : vector<8x1xf32> to vector<8x8xf32>
    %57 = arith.mulf %52, %56 : vector<8x8xf32>
    %58 = arith.truncf %57 : vector<8x8xf32> to vector<8x8xbf16>
    %59 = vector.extract_strided_slice %43 {offsets = [0, 32], sizes = [8, 8], strides = [1, 1]} : vector<8x64xbf16> to vector<8x8xbf16>
    %cst_23 = arith.constant dense<0.000000e+00> : vector<8x8xf32>
    %60 = tpu.matmul %58, %59, %cst_23 {dimension_numbers = #tpu.dot_dimension_numbers<[1], [0], [0], [1], [0, 0, 1, 1], [], []>} : vector<8x8xbf16>, vector<8x8xbf16>, vector<8x8xf32> -> vector<8x8xf32>
    %61 = arith.truncf %60 : vector<8x8xf32> to vector<8x8xbf16>
    %c0_24 = arith.constant 0 : index
    %c0_25 = arith.constant 0 : index
    %62 = vector.load %arg16[%c0_24, %c0_25] : memref<16x32xbf16, #tpu.memory_space<vmem>>, vector<8x8xbf16>
    tpu.vector_store %arg16[%c0_24, %c0_25], %61 {strides = array<i32>} : memref<16x32xbf16, #tpu.memory_space<vmem>>, vector<8x8xbf16>,
    %63 = vector.extract_strided_slice %42 {offsets = [0, 8], sizes = [8, 8], strides = [1, 1]} : vector<8x32xbf16> to vector<8x8xbf16>
    %64 = vector.extract_strided_slice %43 {offsets = [0, 8], sizes = [8, 8], strides = [1, 1]} : vector<8x64xbf16> to vector<8x8xbf16>
    %cst_26 = arith.constant dense<0.000000e+00> : vector<8x8xf32>
    %65 = tpu.matmul %63, %64, %cst_26 {dimension_numbers = #tpu.dot_dimension_numbers<[1], [1], [0], [0], [0, 0, 1, 0], [], []>} : vector<8x8xbf16>, vector<8x8xbf16>, vector<8x8xf32> -> vector<8x8xf32>
    %66 = arith.addf %65, %3 : vector<8x8xf32>
    %cst_27 = arith.constant dense<0xFF800000> : vector<8xf32>
    %67 = vector.multi_reduction <maximumf>, %66, %cst_27 [1] : vector<8x8xf32> to vector<8xf32>
    %68 = vector.shape_cast %67 : vector<8xf32> to vector<8x1xf32>
    %69 = vector.broadcast %68 : vector<8x1xf32> to vector<8x8xf32>
    %70 = arith.subf %66, %69 : vector<8x8xf32>
    %71 = math.exp %70 : vector<8x8xf32>
    %cst_28 = arith.constant dense<0.000000e+00> : vector<8xf32>
    %72 = vector.multi_reduction <add>, %71, %cst_28 [1] : vector<8x8xf32> to vector<8xf32>
    %73 = vector.shape_cast %72 : vector<8xf32> to vector<8x1xf32>
    %74 = tpu.reciprocal %73 {approx = true} : vector<8x1xf32> -> vector<8x1xf32>
    %75 = vector.broadcast %74 : vector<8x1xf32> to vector<8x8xf32>
    %76 = arith.mulf %71, %75 : vector<8x8xf32>
    %77 = arith.truncf %76 : vector<8x8xf32> to vector<8x8xbf16>
    %78 = vector.extract_strided_slice %43 {offsets = [0, 40], sizes = [8, 8], strides = [1, 1]} : vector<8x64xbf16> to vector<8x8xbf16>
    %cst_29 = arith.constant dense<0.000000e+00> : vector<8x8xf32>
    %79 = tpu.matmul %77, %78, %cst_29 {dimension_numbers = #tpu.dot_dimension_numbers<[1], [0], [0], [1], [0, 0, 1, 1], [], []>} : vector<8x8xbf16>, vector<8x8xbf16>, vector<8x8xf32> -> vector<8x8xf32>
    %80 = arith.truncf %79 : vector<8x8xf32> to vector<8x8xbf16>
    %c0_30 = arith.constant 0 : index
    %c8 = arith.constant 8 : index
    %81 = vector.load %arg16[%c0_30, %c8] : memref<16x32xbf16, #tpu.memory_space<vmem>>, vector<8x8xbf16>
    tpu.vector_store %arg16[%c0_30, %c8], %80 {strides = array<i32>} : memref<16x32xbf16, #tpu.memory_space<vmem>>, vector<8x8xbf16>,
    %82 = vector.extract_strided_slice %42 {offsets = [0, 16], sizes = [8, 8], strides = [1, 1]} : vector<8x32xbf16> to vector<8x8xbf16>
    %83 = vector.extract_strided_slice %43 {offsets = [0, 16], sizes = [8, 8], strides = [1, 1]} : vector<8x64xbf16> to vector<8x8xbf16>
    %cst_31 = arith.constant dense<0.000000e+00> : vector<8x8xf32>
    %84 = tpu.matmul %82, %83, %cst_31 {dimension_numbers = #tpu.dot_dimension_numbers<[1], [1], [0], [0], [0, 0, 1, 0], [], []>} : vector<8x8xbf16>, vector<8x8xbf16>, vector<8x8xf32> -> vector<8x8xf32>
    %85 = arith.addf %84, %3 : vector<8x8xf32>
    %cst_32 = arith.constant dense<0xFF800000> : vector<8xf32>
    %86 = vector.multi_reduction <maximumf>, %85, %cst_32 [1] : vector<8x8xf32> to vector<8xf32>
    %87 = vector.shape_cast %86 : vector<8xf32> to vector<8x1xf32>
    %88 = vector.broadcast %87 : vector<8x1xf32> to vector<8x8xf32>
    %89 = arith.subf %85, %88 : vector<8x8xf32>
    %90 = math.exp %89 : vector<8x8xf32>
    %cst_33 = arith.constant dense<0.000000e+00> : vector<8xf32>
    %91 = vector.multi_reduction <add>, %90, %cst_33 [1] : vector<8x8xf32> to vector<8xf32>
    %92 = vector.shape_cast %91 : vector<8xf32> to vector<8x1xf32>
    %93 = tpu.reciprocal %92 {approx = true} : vector<8x1xf32> -> vector<8x1xf32>
    %94 = vector.broadcast %93 : vector<8x1xf32> to vector<8x8xf32>
    %95 = arith.mulf %90, %94 : vector<8x8xf32>
    %96 = arith.truncf %95 : vector<8x8xf32> to vector<8x8xbf16>
    %97 = vector.extract_strided_slice %43 {offsets = [0, 48], sizes = [8, 8], strides = [1, 1]} : vector<8x64xbf16> to vector<8x8xbf16>
    %cst_34 = arith.constant dense<0.000000e+00> : vector<8x8xf32>
    %98 = tpu.matmul %96, %97, %cst_34 {dimension_numbers = #tpu.dot_dimension_numbers<[1], [0], [0], [1], [0, 0, 1, 1], [], []>} : vector<8x8xbf16>, vector<8x8xbf16>, vector<8x8xf32> -> vector<8x8xf32>
    %99 = arith.truncf %98 : vector<8x8xf32> to vector<8x8xbf16>
    %c0_35 = arith.constant 0 : index
    %c16 = arith.constant 16 : index
    %100 = vector.load %arg16[%c0_35, %c16] : memref<16x32xbf16, #tpu.memory_space<vmem>>, vector<8x8xbf16>
    tpu.vector_store %arg16[%c0_35, %c16], %99 {strides = array<i32>} : memref<16x32xbf16, #tpu.memory_space<vmem>>, vector<8x8xbf16>,
    %101 = vector.extract_strided_slice %42 {offsets = [0, 24], sizes = [8, 8], strides = [1, 1]} : vector<8x32xbf16> to vector<8x8xbf16>
    %102 = vector.extract_strided_slice %43 {offsets = [0, 24], sizes = [8, 8], strides = [1, 1]} : vector<8x64xbf16> to vector<8x8xbf16>
    %cst_36 = arith.constant dense<0.000000e+00> : vector<8x8xf32>
    %103 = tpu.matmul %101, %102, %cst_36 {dimension_numbers = #tpu.dot_dimension_numbers<[1], [1], [0], [0], [0, 0, 1, 0], [], []>} : vector<8x8xbf16>, vector<8x8xbf16>, vector<8x8xf32> -> vector<8x8xf32>
    %104 = arith.addf %103, %3 : vector<8x8xf32>
    %cst_37 = arith.constant dense<0xFF800000> : vector<8xf32>
    %105 = vector.multi_reduction <maximumf>, %104, %cst_37 [1] : vector<8x8xf32> to vector<8xf32>
    %106 = vector.shape_cast %105 : vector<8xf32> to vector<8x1xf32>
    %107 = vector.broadcast %106 : vector<8x1xf32> to vector<8x8xf32>
    %108 = arith.subf %104, %107 : vector<8x8xf32>
    %109 = math.exp %108 : vector<8x8xf32>
    %cst_38 = arith.constant dense<0.000000e+00> : vector<8xf32>
    %110 = vector.multi_reduction <add>, %109, %cst_38 [1] : vector<8x8xf32> to vector<8xf32>
    %111 = vector.shape_cast %110 : vector<8xf32> to vector<8x1xf32>
    %112 = tpu.reciprocal %111 {approx = true} : vector<8x1xf32> -> vector<8x1xf32>
    %113 = vector.broadcast %112 : vector<8x1xf32> to vector<8x8xf32>
    %114 = arith.mulf %109, %113 : vector<8x8xf32>
    %115 = arith.truncf %114 : vector<8x8xf32> to vector<8x8xbf16>
    %116 = vector.extract_strided_slice %43 {offsets = [0, 56], sizes = [8, 8], strides = [1, 1]} : vector<8x64xbf16> to vector<8x8xbf16>
    %cst_39 = arith.constant dense<0.000000e+00> : vector<8x8xf32>
    %117 = tpu.matmul %115, %116, %cst_39 {dimension_numbers = #tpu.dot_dimension_numbers<[1], [0], [0], [1], [0, 0, 1, 1], [], []>} : vector<8x8xbf16>, vector<8x8xbf16>, vector<8x8xf32> -> vector<8x8xf32>
    %118 = arith.truncf %117 : vector<8x8xf32> to vector<8x8xbf16>
    %c0_40 = arith.constant 0 : index
    %c24 = arith.constant 24 : index
    %119 = vector.load %arg16[%c0_40, %c24] : memref<16x32xbf16, #tpu.memory_space<vmem>>, vector<8x8xbf16>
    tpu.vector_store %arg16[%c0_40, %c24], %118 {strides = array<i32>} : memref<16x32xbf16, #tpu.memory_space<vmem>>, vector<8x8xbf16>,
    %120 = vector.extract_strided_slice %40 {offsets = [8, 0], sizes = [8, 32], strides = [1, 1]} : vector<16x32xbf16> to vector<8x32xbf16>
    %121 = vector.extract_strided_slice %41 {offsets = [8, 0], sizes = [8, 64], strides = [1, 1]} : vector<16x64xbf16> to vector<8x64xbf16>
    %122 = vector.extract_strided_slice %120 {offsets = [0, 0], sizes = [8, 8], strides = [1, 1]} : vector<8x32xbf16> to vector<8x8xbf16>
    %123 = vector.extract_strided_slice %121 {offsets = [0, 0], sizes = [8, 8], strides = [1, 1]} : vector<8x64xbf16> to vector<8x8xbf16>
    %cst_41 = arith.constant dense<0.000000e+00> : vector<8x8xf32>
    %124 = tpu.matmul %122, %123, %cst_41 {dimension_numbers = #tpu.dot_dimension_numbers<[1], [1], [0], [0], [0, 0, 1, 0], [], []>} : vector<8x8xbf16>, vector<8x8xbf16>, vector<8x8xf32> -> vector<8x8xf32>
    %125 = arith.addf %124, %3 : vector<8x8xf32>
    %cst_42 = arith.constant dense<0xFF800000> : vector<8xf32>
    %126 = vector.multi_reduction <maximumf>, %125, %cst_42 [1] : vector<8x8xf32> to vector<8xf32>
    %127 = vector.shape_cast %126 : vector<8xf32> to vector<8x1xf32>
    %128 = vector.broadcast %127 : vector<8x1xf32> to vector<8x8xf32>
    %129 = arith.subf %125, %128 : vector<8x8xf32>
    %130 = math.exp %129 : vector<8x8xf32>
    %cst_43 = arith.constant dense<0.000000e+00> : vector<8xf32>
    %131 = vector.multi_reduction <add>, %130, %cst_43 [1] : vector<8x8xf32> to vector<8xf32>
    %132 = vector.shape_cast %131 : vector<8xf32> to vector<8x1xf32>
    %133 = tpu.reciprocal %132 {approx = true} : vector<8x1xf32> -> vector<8x1xf32>
    %134 = vector.broadcast %133 : vector<8x1xf32> to vector<8x8xf32>
    %135 = arith.mulf %130, %134 : vector<8x8xf32>
    %136 = arith.truncf %135 : vector<8x8xf32> to vector<8x8xbf16>
    %137 = vector.extract_strided_slice %121 {offsets = [0, 32], sizes = [8, 8], strides = [1, 1]} : vector<8x64xbf16> to vector<8x8xbf16>
    %cst_44 = arith.constant dense<0.000000e+00> : vector<8x8xf32>
    %138 = tpu.matmul %136, %137, %cst_44 {dimension_numbers = #tpu.dot_dimension_numbers<[1], [0], [0], [1], [0, 0, 1, 1], [], []>} : vector<8x8xbf16>, vector<8x8xbf16>, vector<8x8xf32> -> vector<8x8xf32>
    %139 = arith.truncf %138 : vector<8x8xf32> to vector<8x8xbf16>
    %c8_45 = arith.constant 8 : index
    %c0_46 = arith.constant 0 : index
    %140 = vector.load %arg16[%c8_45, %c0_46] : memref<16x32xbf16, #tpu.memory_space<vmem>>, vector<8x8xbf16>
    tpu.vector_store %arg16[%c8_45, %c0_46], %139 {strides = array<i32>} : memref<16x32xbf16, #tpu.memory_space<vmem>>, vector<8x8xbf16>,
    %141 = vector.extract_strided_slice %120 {offsets = [0, 8], sizes = [8, 8], strides = [1, 1]} : vector<8x32xbf16> to vector<8x8xbf16>
    %142 = vector.extract_strided_slice %121 {offsets = [0, 8], sizes = [8, 8], strides = [1, 1]} : vector<8x64xbf16> to vector<8x8xbf16>
    %cst_47 = arith.constant dense<0.000000e+00> : vector<8x8xf32>
    %143 = tpu.matmul %141, %142, %cst_47 {dimension_numbers = #tpu.dot_dimension_numbers<[1], [1], [0], [0], [0, 0, 1, 0], [], []>} : vector<8x8xbf16>, vector<8x8xbf16>, vector<8x8xf32> -> vector<8x8xf32>
    %144 = arith.addf %143, %3 : vector<8x8xf32>
    %cst_48 = arith.constant dense<0xFF800000> : vector<8xf32>
    %145 = vector.multi_reduction <maximumf>, %144, %cst_48 [1] : vector<8x8xf32> to vector<8xf32>
    %146 = vector.shape_cast %145 : vector<8xf32> to vector<8x1xf32>
    %147 = vector.broadcast %146 : vector<8x1xf32> to vector<8x8xf32>
    %148 = arith.subf %144, %147 : vector<8x8xf32>
    %149 = math.exp %148 : vector<8x8xf32>
    %cst_49 = arith.constant dense<0.000000e+00> : vector<8xf32>
    %150 = vector.multi_reduction <add>, %149, %cst_49 [1] : vector<8x8xf32> to vector<8xf32>
    %151 = vector.shape_cast %150 : vector<8xf32> to vector<8x1xf32>
    %152 = tpu.reciprocal %151 {approx = true} : vector<8x1xf32> -> vector<8x1xf32>
    %153 = vector.broadcast %152 : vector<8x1xf32> to vector<8x8xf32>
    %154 = arith.mulf %149, %153 : vector<8x8xf32>
    %155 = arith.truncf %154 : vector<8x8xf32> to vector<8x8xbf16>
    %156 = vector.extract_strided_slice %121 {offsets = [0, 40], sizes = [8, 8], strides = [1, 1]} : vector<8x64xbf16> to vector<8x8xbf16>
    %cst_50 = arith.constant dense<0.000000e+00> : vector<8x8xf32>
    %157 = tpu.matmul %155, %156, %cst_50 {dimension_numbers = #tpu.dot_dimension_numbers<[1], [0], [0], [1], [0, 0, 1, 1], [], []>} : vector<8x8xbf16>, vector<8x8xbf16>, vector<8x8xf32> -> vector<8x8xf32>
    %158 = arith.truncf %157 : vector<8x8xf32> to vector<8x8xbf16>
    %c8_51 = arith.constant 8 : index
    %c8_52 = arith.constant 8 : index
    %159 = vector.load %arg16[%c8_51, %c8_52] : memref<16x32xbf16, #tpu.memory_space<vmem>>, vector<8x8xbf16>
    tpu.vector_store %arg16[%c8_51, %c8_52], %158 {strides = array<i32>} : memref<16x32xbf16, #tpu.memory_space<vmem>>, vector<8x8xbf16>,
    %160 = vector.extract_strided_slice %120 {offsets = [0, 16], sizes = [8, 8], strides = [1, 1]} : vector<8x32xbf16> to vector<8x8xbf16>
    %161 = vector.extract_strided_slice %121 {offsets = [0, 16], sizes = [8, 8], strides = [1, 1]} : vector<8x64xbf16> to vector<8x8xbf16>
    %cst_53 = arith.constant dense<0.000000e+00> : vector<8x8xf32>
    %162 = tpu.matmul %160, %161, %cst_53 {dimension_numbers = #tpu.dot_dimension_numbers<[1], [1], [0], [0], [0, 0, 1, 0], [], []>} : vector<8x8xbf16>, vector<8x8xbf16>, vector<8x8xf32> -> vector<8x8xf32>
    %163 = arith.addf %162, %3 : vector<8x8xf32>
    %cst_54 = arith.constant dense<0xFF800000> : vector<8xf32>
    %164 = vector.multi_reduction <maximumf>, %163, %cst_54 [1] : vector<8x8xf32> to vector<8xf32>
    %165 = vector.shape_cast %164 : vector<8xf32> to vector<8x1xf32>
    %166 = vector.broadcast %165 : vector<8x1xf32> to vector<8x8xf32>
    %167 = arith.subf %163, %166 : vector<8x8xf32>
    %168 = math.exp %167 : vector<8x8xf32>
    %cst_55 = arith.constant dense<0.000000e+00> : vector<8xf32>
    %169 = vector.multi_reduction <add>, %168, %cst_55 [1] : vector<8x8xf32> to vector<8xf32>
    %170 = vector.shape_cast %169 : vector<8xf32> to vector<8x1xf32>
    %171 = tpu.reciprocal %170 {approx = true} : vector<8x1xf32> -> vector<8x1xf32>
    %172 = vector.broadcast %171 : vector<8x1xf32> to vector<8x8xf32>
    %173 = arith.mulf %168, %172 : vector<8x8xf32>
    %174 = arith.truncf %173 : vector<8x8xf32> to vector<8x8xbf16>
    %175 = vector.extract_strided_slice %121 {offsets = [0, 48], sizes = [8, 8], strides = [1, 1]} : vector<8x64xbf16> to vector<8x8xbf16>
    %cst_56 = arith.constant dense<0.000000e+00> : vector<8x8xf32>
    %176 = tpu.matmul %174, %175, %cst_56 {dimension_numbers = #tpu.dot_dimension_numbers<[1], [0], [0], [1], [0, 0, 1, 1], [], []>} : vector<8x8xbf16>, vector<8x8xbf16>, vector<8x8xf32> -> vector<8x8xf32>
    %177 = arith.truncf %176 : vector<8x8xf32> to vector<8x8xbf16>
    %c8_57 = arith.constant 8 : index
    %c16_58 = arith.constant 16 : index
    %178 = vector.load %arg16[%c8_57, %c16_58] : memref<16x32xbf16, #tpu.memory_space<vmem>>, vector<8x8xbf16>
    tpu.vector_store %arg16[%c8_57, %c16_58], %177 {strides = array<i32>} : memref<16x32xbf16, #tpu.memory_space<vmem>>, vector<8x8xbf16>,
    %179 = vector.extract_strided_slice %120 {offsets = [0, 24], sizes = [8, 8], strides = [1, 1]} : vector<8x32xbf16> to vector<8x8xbf16>
    %180 = vector.extract_strided_slice %121 {offsets = [0, 24], sizes = [8, 8], strides = [1, 1]} : vector<8x64xbf16> to vector<8x8xbf16>
    %cst_59 = arith.constant dense<0.000000e+00> : vector<8x8xf32>
    %181 = tpu.matmul %179, %180, %cst_59 {dimension_numbers = #tpu.dot_dimension_numbers<[1], [1], [0], [0], [0, 0, 1, 0], [], []>} : vector<8x8xbf16>, vector<8x8xbf16>, vector<8x8xf32> -> vector<8x8xf32>
    %182 = arith.addf %181, %3 : vector<8x8xf32>
    %cst_60 = arith.constant dense<0xFF800000> : vector<8xf32>
    %183 = vector.multi_reduction <maximumf>, %182, %cst_60 [1] : vector<8x8xf32> to vector<8xf32>
    %184 = vector.shape_cast %183 : vector<8xf32> to vector<8x1xf32>
    %185 = vector.broadcast %184 : vector<8x1xf32> to vector<8x8xf32>
    %186 = arith.subf %182, %185 : vector<8x8xf32>
    %187 = math.exp %186 : vector<8x8xf32>
    %cst_61 = arith.constant dense<0.000000e+00> : vector<8xf32>
    %188 = vector.multi_reduction <add>, %187, %cst_61 [1] : vector<8x8xf32> to vector<8xf32>
    %189 = vector.shape_cast %188 : vector<8xf32> to vector<8x1xf32>
    %190 = tpu.reciprocal %189 {approx = true} : vector<8x1xf32> -> vector<8x1xf32>
    %191 = vector.broadcast %190 : vector<8x1xf32> to vector<8x8xf32>
    %192 = arith.mulf %187, %191 : vector<8x8xf32>
    %193 = arith.truncf %192 : vector<8x8xf32> to vector<8x8xbf16>
    %194 = vector.extract_strided_slice %121 {offsets = [0, 56], sizes = [8, 8], strides = [1, 1]} : vector<8x64xbf16> to vector<8x8xbf16>
    %cst_62 = arith.constant dense<0.000000e+00> : vector<8x8xf32>
    %195 = tpu.matmul %193, %194, %cst_62 {dimension_numbers = #tpu.dot_dimension_numbers<[1], [0], [0], [1], [0, 0, 1, 1], [], []>} : vector<8x8xbf16>, vector<8x8xbf16>, vector<8x8xf32> -> vector<8x8xf32>
    %196 = arith.truncf %195 : vector<8x8xf32> to vector<8x8xbf16>
    %c8_63 = arith.constant 8 : index
    %c24_64 = arith.constant 24 : index
    %197 = vector.load %arg16[%c8_63, %c24_64] : memref<16x32xbf16, #tpu.memory_space<vmem>>, vector<8x8xbf16>
    tpu.vector_store %arg16[%c8_63, %c24_64], %196 {strides = array<i32>} : memref<16x32xbf16, #tpu.memory_space<vmem>>, vector<8x8xbf16>,
    %c0_65 = arith.constant 0 : index
    %c0_66 = arith.constant 0 : index
    %198 = vector.load %arg16[%c0_65, %c0_66] : memref<16x32xbf16, #tpu.memory_space<vmem>>, vector<16x32xbf16>
    %c0_67 = arith.constant 0 : index
    %c0_68 = arith.constant 0 : index
    %c0_69 = arith.constant 0 : index
    %199 = vector.load %arg6[%c0_67, %c0_68, %c0_69] : memref<1x32x32xbf16, #tpu.memory_space<vmem>>, vector<1x32x32xbf16>
    %200 = vector.shape_cast %199 : vector<1x32x32xbf16> to vector<32x32xbf16>
    %cst_70 = arith.constant dense<0.000000e+00> : vector<16x32xf32>
    %201 = tpu.matmul %198, %200, %cst_70 {dimension_numbers = #tpu.dot_dimension_numbers<[1], [0], [0], [1], [0, 0, 1, 1], [], []>} : vector<16x32xbf16>, vector<32x32xbf16>, vector<16x32xf32> -> vector<16x32xf32>
    %202 = arith.addf %4, %201 : vector<16x32xf32>
    %c0_71 = arith.constant 0 : index
    %c2 = arith.constant 2 : index
    %c0_72 = arith.constant 0 : index
    %203 = vector.load %arg14[%c0_71, %c2, %c0_72] : memref<1x10x32xf32, #tpu.memory_space<vmem>>, vector<1x1x32xf32>
    %204 = vector.shape_cast %203 : vector<1x1x32xf32> to vector<1x32xf32>
    %205 = vector.broadcast %204 : vector<1x32xf32> to vector<16x32xf32>
    %206 = arith.addf %202, %205 : vector<16x32xf32>
    %c0_73 = arith.constant 0 : index
    %c0_74 = arith.constant 0 : index
    %207 = vector.load %arg15[%c0_73, %c0_74] : memref<16x32xf32, #tpu.memory_space<vmem>>, vector<16x32xf32>
    tpu.vector_store %arg15[%c0_73, %c0_74], %206 {strides = array<i32>} : memref<16x32xf32, #tpu.memory_space<vmem>>, vector<16x32xf32>,
    %c0_75 = arith.constant 0 : index
    %c0_76 = arith.constant 0 : index
    %208 = vector.load %arg15[%c0_75, %c0_76] : memref<16x32xf32, #tpu.memory_space<vmem>>, vector<16x32xf32>
    %c0_77 = arith.constant 0 : index
    %c3 = arith.constant 3 : index
    %c0_78 = arith.constant 0 : index
    %209 = vector.load %arg14[%c0_77, %c3, %c0_78] : memref<1x10x32xf32, #tpu.memory_space<vmem>>, vector<1x1x32xf32>
    %210 = vector.shape_cast %209 : vector<1x1x32xf32> to vector<1x32xf32>
    %c0_79 = arith.constant 0 : index
    %c4 = arith.constant 4 : index
    %c0_80 = arith.constant 0 : index
    %211 = vector.load %arg14[%c0_79, %c4, %c0_80] : memref<1x10x32xf32, #tpu.memory_space<vmem>>, vector<1x1x32xf32>
    %212 = vector.shape_cast %211 : vector<1x1x32xf32> to vector<1x32xf32>
    %cst_81 = arith.constant dense<0.000000e+00> : vector<16xf32>
    %213 = vector.multi_reduction <add>, %208, %cst_81 [1] : vector<16x32xf32> to vector<16xf32>
    %214 = vector.shape_cast %213 : vector<16xf32> to vector<16x1xf32>
    %cst_82 = arith.constant 3.200000e+01 : f32
    %215 = vector.broadcast %cst_82 : f32 to vector<16x1xf32>
    %216 = arith.divf %214, %215 : vector<16x1xf32>
    %217 = vector.broadcast %216 : vector<16x1xf32> to vector<16x32xf32>
    %218 = arith.subf %208, %217 : vector<16x32xf32>
    %219 = arith.mulf %218, %218 : vector<16x32xf32>
    %cst_83 = arith.constant dense<0.000000e+00> : vector<16xf32>
    %220 = vector.multi_reduction <add>, %219, %cst_83 [1] : vector<16x32xf32> to vector<16xf32>
    %221 = vector.shape_cast %220 : vector<16xf32> to vector<16x1xf32>
    %cst_84 = arith.constant 3.200000e+01 : f32
    %222 = vector.broadcast %cst_84 : f32 to vector<16x1xf32>
    %223 = arith.divf %221, %222 : vector<16x1xf32>
    %224 = vector.broadcast %216 : vector<16x1xf32> to vector<16x32xf32>
    %225 = arith.subf %208, %224 : vector<16x32xf32>
    %cst_85 = arith.constant 9.99999974E-6 : f32
    %226 = vector.broadcast %cst_85 : f32 to vector<16x1xf32>
    %227 = arith.addf %223, %226 : vector<16x1xf32>
    %228 = math.rsqrt %227 : vector<16x1xf32>
    %229 = vector.broadcast %228 : vector<16x1xf32> to vector<16x32xf32>
    %230 = arith.mulf %225, %229 : vector<16x32xf32>
    %231 = vector.broadcast %210 : vector<1x32xf32> to vector<16x32xf32>
    %232 = arith.mulf %230, %231 : vector<16x32xf32>
    %233 = vector.broadcast %212 : vector<1x32xf32> to vector<16x32xf32>
    %234 = arith.addf %232, %233 : vector<16x32xf32>
    %235 = arith.truncf %234 : vector<16x32xf32> to vector<16x32xbf16>
    %c0_86 = arith.constant 0 : index
    %c0_87 = arith.constant 0 : index
    %c0_88 = arith.constant 0 : index
    %236 = vector.load %arg7[%c0_86, %c0_87, %c0_88] : memref<1x32x32xbf16, #tpu.memory_space<vmem>>, vector<1x32x32xbf16>
    %237 = vector.shape_cast %236 : vector<1x32x32xbf16> to vector<32x32xbf16>
    %cst_89 = arith.constant dense<0.000000e+00> : vector<16x32xf32>
    %238 = tpu.matmul %235, %237, %cst_89 {dimension_numbers = #tpu.dot_dimension_numbers<[1], [0], [0], [1], [0, 0, 1, 1], [], []>} : vector<16x32xbf16>, vector<32x32xbf16>, vector<16x32xf32> -> vector<16x32xf32>
    %c0_90 = arith.constant 0 : index
    %c5 = arith.constant 5 : index
    %c0_91 = arith.constant 0 : index
    %239 = vector.load %arg14[%c0_90, %c5, %c0_91] : memref<1x10x32xf32, #tpu.memory_space<vmem>>, vector<1x1x32xf32>
    %240 = vector.shape_cast %239 : vector<1x1x32xf32> to vector<1x32xf32>
    %241 = vector.broadcast %240 : vector<1x32xf32> to vector<16x32xf32>
    %242 = arith.addf %238, %241 : vector<16x32xf32>
    %243 = arith.truncf %242 : vector<16x32xf32> to vector<16x32xbf16>
    %c0_92 = arith.constant 0 : index
    %c0_93 = arith.constant 0 : index
    %244 = vector.load %arg2[%c0_92, %c0_93] : memref<32x32xbf16, #tpu.memory_space<vmem>>, vector<32x32xbf16>
    %c0_94 = arith.constant 0 : index
    %c0_95 = arith.constant 0 : index
    %c0_96 = arith.constant 0 : index
    %245 = vector.load %arg8[%c0_94, %c0_95, %c0_96] : memref<1x32x64xbf16, #tpu.memory_space<vmem>>, vector<1x32x64xbf16>
    %246 = vector.shape_cast %245 : vector<1x32x64xbf16> to vector<32x64xbf16>
    %cst_97 = arith.constant dense<0.000000e+00> : vector<32x64xf32>
    %247 = tpu.matmul %244, %246, %cst_97 {dimension_numbers = #tpu.dot_dimension_numbers<[1], [0], [0], [1], [0, 0, 1, 1], [], []>} : vector<32x32xbf16>, vector<32x64xbf16>, vector<32x64xf32> -> vector<32x64xf32>
    %c0_98 = arith.constant 0 : index
    %c0_99 = arith.constant 0 : index
    %c0_100 = arith.constant 0 : index
    %248 = vector.load %arg9[%c0_98, %c0_99, %c0_100] : memref<1x1x64xf32, #tpu.memory_space<vmem>>, vector<1x1x64xf32>
    %249 = vector.shape_cast %248 : vector<1x1x64xf32> to vector<1x64xf32>
    %250 = vector.broadcast %249 : vector<1x64xf32> to vector<32x64xf32>
    %251 = arith.addf %247, %250 : vector<32x64xf32>
    %252 = arith.truncf %251 : vector<32x64xf32> to vector<32x64xbf16>
    %253 = vector.extract_strided_slice %243 {offsets = [0, 0], sizes = [8, 32], strides = [1, 1]} : vector<16x32xbf16> to vector<8x32xbf16>
    %254 = vector.extract_strided_slice %252 {offsets = [0, 0], sizes = [16, 64], strides = [1, 1]} : vector<32x64xbf16> to vector<16x64xbf16>
    %255 = vector.extract_strided_slice %253 {offsets = [0, 0], sizes = [8, 8], strides = [1, 1]} : vector<8x32xbf16> to vector<8x8xbf16>
    %256 = vector.extract_strided_slice %254 {offsets = [0, 0], sizes = [16, 8], strides = [1, 1]} : vector<16x64xbf16> to vector<16x8xbf16>
    %cst_101 = arith.constant dense<0.000000e+00> : vector<8x16xf32>
    %257 = tpu.matmul %255, %256, %cst_101 {dimension_numbers = #tpu.dot_dimension_numbers<[1], [1], [0], [0], [0, 0, 1, 0], [], []>} : vector<8x8xbf16>, vector<16x8xbf16>, vector<8x16xf32> -> vector<8x16xf32>
    %cst_102 = arith.constant dense<0xFF800000> : vector<8xf32>
    %258 = vector.multi_reduction <maximumf>, %257, %cst_102 [1] : vector<8x16xf32> to vector<8xf32>
    %259 = vector.shape_cast %258 : vector<8xf32> to vector<8x1xf32>
    %260 = vector.broadcast %259 : vector<8x1xf32> to vector<8x16xf32>
    %261 = arith.subf %257, %260 : vector<8x16xf32>
    %262 = math.exp %261 : vector<8x16xf32>
    %cst_103 = arith.constant dense<0.000000e+00> : vector<8xf32>
    %263 = vector.multi_reduction <add>, %262, %cst_103 [1] : vector<8x16xf32> to vector<8xf32>
    %264 = vector.shape_cast %263 : vector<8xf32> to vector<8x1xf32>
    %265 = tpu.reciprocal %264 {approx = true} : vector<8x1xf32> -> vector<8x1xf32>
    %266 = vector.broadcast %265 : vector<8x1xf32> to vector<8x16xf32>
    %267 = arith.mulf %262, %266 : vector<8x16xf32>
    %268 = arith.truncf %267 : vector<8x16xf32> to vector<8x16xbf16>
    %269 = vector.extract_strided_slice %254 {offsets = [0, 32], sizes = [16, 8], strides = [1, 1]} : vector<16x64xbf16> to vector<16x8xbf16>
    %cst_104 = arith.constant dense<0.000000e+00> : vector<8x8xf32>
    %270 = tpu.matmul %268, %269, %cst_104 {dimension_numbers = #tpu.dot_dimension_numbers<[1], [0], [0], [1], [0, 0, 1, 1], [], []>} : vector<8x16xbf16>, vector<16x8xbf16>, vector<8x8xf32> -> vector<8x8xf32>
    %271 = arith.truncf %270 : vector<8x8xf32> to vector<8x8xbf16>
    %c0_105 = arith.constant 0 : index
    %c0_106 = arith.constant 0 : index
    %272 = vector.load %arg16[%c0_105, %c0_106] : memref<16x32xbf16, #tpu.memory_space<vmem>>, vector<8x8xbf16>
    tpu.vector_store %arg16[%c0_105, %c0_106], %271 {strides = array<i32>} : memref<16x32xbf16, #tpu.memory_space<vmem>>, vector<8x8xbf16>,
    %273 = vector.extract_strided_slice %253 {offsets = [0, 8], sizes = [8, 8], strides = [1, 1]} : vector<8x32xbf16> to vector<8x8xbf16>
    %274 = vector.extract_strided_slice %254 {offsets = [0, 8], sizes = [16, 8], strides = [1, 1]} : vector<16x64xbf16> to vector<16x8xbf16>
    %cst_107 = arith.constant dense<0.000000e+00> : vector<8x16xf32>
    %275 = tpu.matmul %273, %274, %cst_107 {dimension_numbers = #tpu.dot_dimension_numbers<[1], [1], [0], [0], [0, 0, 1, 0], [], []>} : vector<8x8xbf16>, vector<16x8xbf16>, vector<8x16xf32> -> vector<8x16xf32>
    %cst_108 = arith.constant dense<0xFF800000> : vector<8xf32>
    %276 = vector.multi_reduction <maximumf>, %275, %cst_108 [1] : vector<8x16xf32> to vector<8xf32>
    %277 = vector.shape_cast %276 : vector<8xf32> to vector<8x1xf32>
    %278 = vector.broadcast %277 : vector<8x1xf32> to vector<8x16xf32>
    %279 = arith.subf %275, %278 : vector<8x16xf32>
    %280 = math.exp %279 : vector<8x16xf32>
    %cst_109 = arith.constant dense<0.000000e+00> : vector<8xf32>
    %281 = vector.multi_reduction <add>, %280, %cst_109 [1] : vector<8x16xf32> to vector<8xf32>
    %282 = vector.shape_cast %281 : vector<8xf32> to vector<8x1xf32>
    %283 = tpu.reciprocal %282 {approx = true} : vector<8x1xf32> -> vector<8x1xf32>
    %284 = vector.broadcast %283 : vector<8x1xf32> to vector<8x16xf32>
    %285 = arith.mulf %280, %284 : vector<8x16xf32>
    %286 = arith.truncf %285 : vector<8x16xf32> to vector<8x16xbf16>
    %287 = vector.extract_strided_slice %254 {offsets = [0, 40], sizes = [16, 8], strides = [1, 1]} : vector<16x64xbf16> to vector<16x8xbf16>
    %cst_110 = arith.constant dense<0.000000e+00> : vector<8x8xf32>
    %288 = tpu.matmul %286, %287, %cst_110 {dimension_numbers = #tpu.dot_dimension_numbers<[1], [0], [0], [1], [0, 0, 1, 1], [], []>} : vector<8x16xbf16>, vector<16x8xbf16>, vector<8x8xf32> -> vector<8x8xf32>
    %289 = arith.truncf %288 : vector<8x8xf32> to vector<8x8xbf16>
    %c0_111 = arith.constant 0 : index
    %c8_112 = arith.constant 8 : index
    %290 = vector.load %arg16[%c0_111, %c8_112] : memref<16x32xbf16, #tpu.memory_space<vmem>>, vector<8x8xbf16>
    tpu.vector_store %arg16[%c0_111, %c8_112], %289 {strides = array<i32>} : memref<16x32xbf16, #tpu.memory_space<vmem>>, vector<8x8xbf16>,
    %291 = vector.extract_strided_slice %253 {offsets = [0, 16], sizes = [8, 8], strides = [1, 1]} : vector<8x32xbf16> to vector<8x8xbf16>
    %292 = vector.extract_strided_slice %254 {offsets = [0, 16], sizes = [16, 8], strides = [1, 1]} : vector<16x64xbf16> to vector<16x8xbf16>
    %cst_113 = arith.constant dense<0.000000e+00> : vector<8x16xf32>
    %293 = tpu.matmul %291, %292, %cst_113 {dimension_numbers = #tpu.dot_dimension_numbers<[1], [1], [0], [0], [0, 0, 1, 0], [], []>} : vector<8x8xbf16>, vector<16x8xbf16>, vector<8x16xf32> -> vector<8x16xf32>
    %cst_114 = arith.constant dense<0xFF800000> : vector<8xf32>
    %294 = vector.multi_reduction <maximumf>, %293, %cst_114 [1] : vector<8x16xf32> to vector<8xf32>
    %295 = vector.shape_cast %294 : vector<8xf32> to vector<8x1xf32>
    %296 = vector.broadcast %295 : vector<8x1xf32> to vector<8x16xf32>
    %297 = arith.subf %293, %296 : vector<8x16xf32>
    %298 = math.exp %297 : vector<8x16xf32>
    %cst_115 = arith.constant dense<0.000000e+00> : vector<8xf32>
    %299 = vector.multi_reduction <add>, %298, %cst_115 [1] : vector<8x16xf32> to vector<8xf32>
    %300 = vector.shape_cast %299 : vector<8xf32> to vector<8x1xf32>
    %301 = tpu.reciprocal %300 {approx = true} : vector<8x1xf32> -> vector<8x1xf32>
    %302 = vector.broadcast %301 : vector<8x1xf32> to vector<8x16xf32>
    %303 = arith.mulf %298, %302 : vector<8x16xf32>
    %304 = arith.truncf %303 : vector<8x16xf32> to vector<8x16xbf16>
    %305 = vector.extract_strided_slice %254 {offsets = [0, 48], sizes = [16, 8], strides = [1, 1]} : vector<16x64xbf16> to vector<16x8xbf16>
    %cst_116 = arith.constant dense<0.000000e+00> : vector<8x8xf32>
    %306 = tpu.matmul %304, %305, %cst_116 {dimension_numbers = #tpu.dot_dimension_numbers<[1], [0], [0], [1], [0, 0, 1, 1], [], []>} : vector<8x16xbf16>, vector<16x8xbf16>, vector<8x8xf32> -> vector<8x8xf32>
    %307 = arith.truncf %306 : vector<8x8xf32> to vector<8x8xbf16>
    %c0_117 = arith.constant 0 : index
    %c16_118 = arith.constant 16 : index
    %308 = vector.load %arg16[%c0_117, %c16_118] : memref<16x32xbf16, #tpu.memory_space<vmem>>, vector<8x8xbf16>
    tpu.vector_store %arg16[%c0_117, %c16_118], %307 {strides = array<i32>} : memref<16x32xbf16, #tpu.memory_space<vmem>>, vector<8x8xbf16>,
    %309 = vector.extract_strided_slice %253 {offsets = [0, 24], sizes = [8, 8], strides = [1, 1]} : vector<8x32xbf16> to vector<8x8xbf16>
    %310 = vector.extract_strided_slice %254 {offsets = [0, 24], sizes = [16, 8], strides = [1, 1]} : vector<16x64xbf16> to vector<16x8xbf16>
    %cst_119 = arith.constant dense<0.000000e+00> : vector<8x16xf32>
    %311 = tpu.matmul %309, %310, %cst_119 {dimension_numbers = #tpu.dot_dimension_numbers<[1], [1], [0], [0], [0, 0, 1, 0], [], []>} : vector<8x8xbf16>, vector<16x8xbf16>, vector<8x16xf32> -> vector<8x16xf32>
    %cst_120 = arith.constant dense<0xFF800000> : vector<8xf32>
    %312 = vector.multi_reduction <maximumf>, %311, %cst_120 [1] : vector<8x16xf32> to vector<8xf32>
    %313 = vector.shape_cast %312 : vector<8xf32> to vector<8x1xf32>
    %314 = vector.broadcast %313 : vector<8x1xf32> to vector<8x16xf32>
    %315 = arith.subf %311, %314 : vector<8x16xf32>
    %316 = math.exp %315 : vector<8x16xf32>
    %cst_121 = arith.constant dense<0.000000e+00> : vector<8xf32>
    %317 = vector.multi_reduction <add>, %316, %cst_121 [1] : vector<8x16xf32> to vector<8xf32>
    %318 = vector.shape_cast %317 : vector<8xf32> to vector<8x1xf32>
    %319 = tpu.reciprocal %318 {approx = true} : vector<8x1xf32> -> vector<8x1xf32>
    %320 = vector.broadcast %319 : vector<8x1xf32> to vector<8x16xf32>
    %321 = arith.mulf %316, %320 : vector<8x16xf32>
    %322 = arith.truncf %321 : vector<8x16xf32> to vector<8x16xbf16>
    %323 = vector.extract_strided_slice %254 {offsets = [0, 56], sizes = [16, 8], strides = [1, 1]} : vector<16x64xbf16> to vector<16x8xbf16>
    %cst_122 = arith.constant dense<0.000000e+00> : vector<8x8xf32>
    %324 = tpu.matmul %322, %323, %cst_122 {dimension_numbers = #tpu.dot_dimension_numbers<[1], [0], [0], [1], [0, 0, 1, 1], [], []>} : vector<8x16xbf16>, vector<16x8xbf16>, vector<8x8xf32> -> vector<8x8xf32>
    %325 = arith.truncf %324 : vector<8x8xf32> to vector<8x8xbf16>
    %c0_123 = arith.constant 0 : index
    %c24_124 = arith.constant 24 : index
    %326 = vector.load %arg16[%c0_123, %c24_124] : memref<16x32xbf16, #tpu.memory_space<vmem>>, vector<8x8xbf16>
    tpu.vector_store %arg16[%c0_123, %c24_124], %325 {strides = array<i32>} : memref<16x32xbf16, #tpu.memory_space<vmem>>, vector<8x8xbf16>,
    %327 = vector.extract_strided_slice %243 {offsets = [8, 0], sizes = [8, 32], strides = [1, 1]} : vector<16x32xbf16> to vector<8x32xbf16>
    %328 = vector.extract_strided_slice %252 {offsets = [16, 0], sizes = [16, 64], strides = [1, 1]} : vector<32x64xbf16> to vector<16x64xbf16>
    %329 = vector.extract_strided_slice %327 {offsets = [0, 0], sizes = [8, 8], strides = [1, 1]} : vector<8x32xbf16> to vector<8x8xbf16>
    %330 = vector.extract_strided_slice %328 {offsets = [0, 0], sizes = [16, 8], strides = [1, 1]} : vector<16x64xbf16> to vector<16x8xbf16>
    %cst_125 = arith.constant dense<0.000000e+00> : vector<8x16xf32>
    %331 = tpu.matmul %329, %330, %cst_125 {dimension_numbers = #tpu.dot_dimension_numbers<[1], [1], [0], [0], [0, 0, 1, 0], [], []>} : vector<8x8xbf16>, vector<16x8xbf16>, vector<8x16xf32> -> vector<8x16xf32>
    %cst_126 = arith.constant dense<0xFF800000> : vector<8xf32>
    %332 = vector.multi_reduction <maximumf>, %331, %cst_126 [1] : vector<8x16xf32> to vector<8xf32>
    %333 = vector.shape_cast %332 : vector<8xf32> to vector<8x1xf32>
    %334 = vector.broadcast %333 : vector<8x1xf32> to vector<8x16xf32>
    %335 = arith.subf %331, %334 : vector<8x16xf32>
    %336 = math.exp %335 : vector<8x16xf32>
    %cst_127 = arith.constant dense<0.000000e+00> : vector<8xf32>
    %337 = vector.multi_reduction <add>, %336, %cst_127 [1] : vector<8x16xf32> to vector<8xf32>
    %338 = vector.shape_cast %337 : vector<8xf32> to vector<8x1xf32>
    %339 = tpu.reciprocal %338 {approx = true} : vector<8x1xf32> -> vector<8x1xf32>
    %340 = vector.broadcast %339 : vector<8x1xf32> to vector<8x16xf32>
    %341 = arith.mulf %336, %340 : vector<8x16xf32>
    %342 = arith.truncf %341 : vector<8x16xf32> to vector<8x16xbf16>
    %343 = vector.extract_strided_slice %328 {offsets = [0, 32], sizes = [16, 8], strides = [1, 1]} : vector<16x64xbf16> to vector<16x8xbf16>
    %cst_128 = arith.constant dense<0.000000e+00> : vector<8x8xf32>
    %344 = tpu.matmul %342, %343, %cst_128 {dimension_numbers = #tpu.dot_dimension_numbers<[1], [0], [0], [1], [0, 0, 1, 1], [], []>} : vector<8x16xbf16>, vector<16x8xbf16>, vector<8x8xf32> -> vector<8x8xf32>
    %345 = arith.truncf %344 : vector<8x8xf32> to vector<8x8xbf16>
    %c8_129 = arith.constant 8 : index
    %c0_130 = arith.constant 0 : index
    %346 = vector.load %arg16[%c8_129, %c0_130] : memref<16x32xbf16, #tpu.memory_space<vmem>>, vector<8x8xbf16>
    tpu.vector_store %arg16[%c8_129, %c0_130], %345 {strides = array<i32>} : memref<16x32xbf16, #tpu.memory_space<vmem>>, vector<8x8xbf16>,
    %347 = vector.extract_strided_slice %327 {offsets = [0, 8], sizes = [8, 8], strides = [1, 1]} : vector<8x32xbf16> to vector<8x8xbf16>
    %348 = vector.extract_strided_slice %328 {offsets = [0, 8], sizes = [16, 8], strides = [1, 1]} : vector<16x64xbf16> to vector<16x8xbf16>
    %cst_131 = arith.constant dense<0.000000e+00> : vector<8x16xf32>
    %349 = tpu.matmul %347, %348, %cst_131 {dimension_numbers = #tpu.dot_dimension_numbers<[1], [1], [0], [0], [0, 0, 1, 0], [], []>} : vector<8x8xbf16>, vector<16x8xbf16>, vector<8x16xf32> -> vector<8x16xf32>
    %cst_132 = arith.constant dense<0xFF800000> : vector<8xf32>
    %350 = vector.multi_reduction <maximumf>, %349, %cst_132 [1] : vector<8x16xf32> to vector<8xf32>
    %351 = vector.shape_cast %350 : vector<8xf32> to vector<8x1xf32>
    %352 = vector.broadcast %351 : vector<8x1xf32> to vector<8x16xf32>
    %353 = arith.subf %349, %352 : vector<8x16xf32>
    %354 = math.exp %353 : vector<8x16xf32>
    %cst_133 = arith.constant dense<0.000000e+00> : vector<8xf32>
    %355 = vector.multi_reduction <add>, %354, %cst_133 [1] : vector<8x16xf32> to vector<8xf32>
    %356 = vector.shape_cast %355 : vector<8xf32> to vector<8x1xf32>
    %357 = tpu.reciprocal %356 {approx = true} : vector<8x1xf32> -> vector<8x1xf32>
    %358 = vector.broadcast %357 : vector<8x1xf32> to vector<8x16xf32>
    %359 = arith.mulf %354, %358 : vector<8x16xf32>
    %360 = arith.truncf %359 : vector<8x16xf32> to vector<8x16xbf16>
    %361 = vector.extract_strided_slice %328 {offsets = [0, 40], sizes = [16, 8], strides = [1, 1]} : vector<16x64xbf16> to vector<16x8xbf16>
    %cst_134 = arith.constant dense<0.000000e+00> : vector<8x8xf32>
    %362 = tpu.matmul %360, %361, %cst_134 {dimension_numbers = #tpu.dot_dimension_numbers<[1], [0], [0], [1], [0, 0, 1, 1], [], []>} : vector<8x16xbf16>, vector<16x8xbf16>, vector<8x8xf32> -> vector<8x8xf32>
    %363 = arith.truncf %362 : vector<8x8xf32> to vector<8x8xbf16>
    %c8_135 = arith.constant 8 : index
    %c8_136 = arith.constant 8 : index
    %364 = vector.load %arg16[%c8_135, %c8_136] : memref<16x32xbf16, #tpu.memory_space<vmem>>, vector<8x8xbf16>
    tpu.vector_store %arg16[%c8_135, %c8_136], %363 {strides = array<i32>} : memref<16x32xbf16, #tpu.memory_space<vmem>>, vector<8x8xbf16>,
    %365 = vector.extract_strided_slice %327 {offsets = [0, 16], sizes = [8, 8], strides = [1, 1]} : vector<8x32xbf16> to vector<8x8xbf16>
    %366 = vector.extract_strided_slice %328 {offsets = [0, 16], sizes = [16, 8], strides = [1, 1]} : vector<16x64xbf16> to vector<16x8xbf16>
    %cst_137 = arith.constant dense<0.000000e+00> : vector<8x16xf32>
    %367 = tpu.matmul %365, %366, %cst_137 {dimension_numbers = #tpu.dot_dimension_numbers<[1], [1], [0], [0], [0, 0, 1, 0], [], []>} : vector<8x8xbf16>, vector<16x8xbf16>, vector<8x16xf32> -> vector<8x16xf32>
    %cst_138 = arith.constant dense<0xFF800000> : vector<8xf32>
    %368 = vector.multi_reduction <maximumf>, %367, %cst_138 [1] : vector<8x16xf32> to vector<8xf32>
    %369 = vector.shape_cast %368 : vector<8xf32> to vector<8x1xf32>
    %370 = vector.broadcast %369 : vector<8x1xf32> to vector<8x16xf32>
    %371 = arith.subf %367, %370 : vector<8x16xf32>
    %372 = math.exp %371 : vector<8x16xf32>
    %cst_139 = arith.constant dense<0.000000e+00> : vector<8xf32>
    %373 = vector.multi_reduction <add>, %372, %cst_139 [1] : vector<8x16xf32> to vector<8xf32>
    %374 = vector.shape_cast %373 : vector<8xf32> to vector<8x1xf32>
    %375 = tpu.reciprocal %374 {approx = true} : vector<8x1xf32> -> vector<8x1xf32>
    %376 = vector.broadcast %375 : vector<8x1xf32> to vector<8x16xf32>
    %377 = arith.mulf %372, %376 : vector<8x16xf32>
    %378 = arith.truncf %377 : vector<8x16xf32> to vector<8x16xbf16>
    %379 = vector.extract_strided_slice %328 {offsets = [0, 48], sizes = [16, 8], strides = [1, 1]} : vector<16x64xbf16> to vector<16x8xbf16>
    %cst_140 = arith.constant dense<0.000000e+00> : vector<8x8xf32>
    %380 = tpu.matmul %378, %379, %cst_140 {dimension_numbers = #tpu.dot_dimension_numbers<[1], [0], [0], [1], [0, 0, 1, 1], [], []>} : vector<8x16xbf16>, vector<16x8xbf16>, vector<8x8xf32> -> vector<8x8xf32>
    %381 = arith.truncf %380 : vector<8x8xf32> to vector<8x8xbf16>
    %c8_141 = arith.constant 8 : index
    %c16_142 = arith.constant 16 : index
    %382 = vector.load %arg16[%c8_141, %c16_142] : memref<16x32xbf16, #tpu.memory_space<vmem>>, vector<8x8xbf16>
    tpu.vector_store %arg16[%c8_141, %c16_142], %381 {strides = array<i32>} : memref<16x32xbf16, #tpu.memory_space<vmem>>, vector<8x8xbf16>,
    %383 = vector.extract_strided_slice %327 {offsets = [0, 24], sizes = [8, 8], strides = [1, 1]} : vector<8x32xbf16> to vector<8x8xbf16>
    %384 = vector.extract_strided_slice %328 {offsets = [0, 24], sizes = [16, 8], strides = [1, 1]} : vector<16x64xbf16> to vector<16x8xbf16>
    %cst_143 = arith.constant dense<0.000000e+00> : vector<8x16xf32>
    %385 = tpu.matmul %383, %384, %cst_143 {dimension_numbers = #tpu.dot_dimension_numbers<[1], [1], [0], [0], [0, 0, 1, 0], [], []>} : vector<8x8xbf16>, vector<16x8xbf16>, vector<8x16xf32> -> vector<8x16xf32>
    %cst_144 = arith.constant dense<0xFF800000> : vector<8xf32>
    %386 = vector.multi_reduction <maximumf>, %385, %cst_144 [1] : vector<8x16xf32> to vector<8xf32>
    %387 = vector.shape_cast %386 : vector<8xf32> to vector<8x1xf32>
    %388 = vector.broadcast %387 : vector<8x1xf32> to vector<8x16xf32>
    %389 = arith.subf %385, %388 : vector<8x16xf32>
    %390 = math.exp %389 : vector<8x16xf32>
    %cst_145 = arith.constant dense<0.000000e+00> : vector<8xf32>
    %391 = vector.multi_reduction <add>, %390, %cst_145 [1] : vector<8x16xf32> to vector<8xf32>
    %392 = vector.shape_cast %391 : vector<8xf32> to vector<8x1xf32>
    %393 = tpu.reciprocal %392 {approx = true} : vector<8x1xf32> -> vector<8x1xf32>
    %394 = vector.broadcast %393 : vector<8x1xf32> to vector<8x16xf32>
    %395 = arith.mulf %390, %394 : vector<8x16xf32>
    %396 = arith.truncf %395 : vector<8x16xf32> to vector<8x16xbf16>
    %397 = vector.extract_strided_slice %328 {offsets = [0, 56], sizes = [16, 8], strides = [1, 1]} : vector<16x64xbf16> to vector<16x8xbf16>
    %cst_146 = arith.constant dense<0.000000e+00> : vector<8x8xf32>
    %398 = tpu.matmul %396, %397, %cst_146 {dimension_numbers = #tpu.dot_dimension_numbers<[1], [0], [0], [1], [0, 0, 1, 1], [], []>} : vector<8x16xbf16>, vector<16x8xbf16>, vector<8x8xf32> -> vector<8x8xf32>
    %399 = arith.truncf %398 : vector<8x8xf32> to vector<8x8xbf16>
    %c8_147 = arith.constant 8 : index
    %c24_148 = arith.constant 24 : index
    %400 = vector.load %arg16[%c8_147, %c24_148] : memref<16x32xbf16, #tpu.memory_space<vmem>>, vector<8x8xbf16>
    tpu.vector_store %arg16[%c8_147, %c24_148], %399 {strides = array<i32>} : memref<16x32xbf16, #tpu.memory_space<vmem>>, vector<8x8xbf16>,
    %c0_149 = arith.constant 0 : index
    %c0_150 = arith.constant 0 : index
    %401 = vector.load %arg16[%c0_149, %c0_150] : memref<16x32xbf16, #tpu.memory_space<vmem>>, vector<16x32xbf16>
    %c0_151 = arith.constant 0 : index
    %c0_152 = arith.constant 0 : index
    %c0_153 = arith.constant 0 : index
    %402 = vector.load %arg10[%c0_151, %c0_152, %c0_153] : memref<1x32x32xbf16, #tpu.memory_space<vmem>>, vector<1x32x32xbf16>
    %403 = vector.shape_cast %402 : vector<1x32x32xbf16> to vector<32x32xbf16>
    %cst_154 = arith.constant dense<0.000000e+00> : vector<16x32xf32>
    %404 = tpu.matmul %401, %403, %cst_154 {dimension_numbers = #tpu.dot_dimension_numbers<[1], [0], [0], [1], [0, 0, 1, 1], [], []>} : vector<16x32xbf16>, vector<32x32xbf16>, vector<16x32xf32> -> vector<16x32xf32>
    %405 = arith.addf %208, %404 : vector<16x32xf32>
    %c0_155 = arith.constant 0 : index
    %c6 = arith.constant 6 : index
    %c0_156 = arith.constant 0 : index
    %406 = vector.load %arg14[%c0_155, %c6, %c0_156] : memref<1x10x32xf32, #tpu.memory_space<vmem>>, vector<1x1x32xf32>
    %407 = vector.shape_cast %406 : vector<1x1x32xf32> to vector<1x32xf32>
    %408 = vector.broadcast %407 : vector<1x32xf32> to vector<16x32xf32>
    %409 = arith.addf %405, %408 : vector<16x32xf32>
    %c0_157 = arith.constant 0 : index
    %c0_158 = arith.constant 0 : index
    %410 = vector.load %arg15[%c0_157, %c0_158] : memref<16x32xf32, #tpu.memory_space<vmem>>, vector<16x32xf32>
    tpu.vector_store %arg15[%c0_157, %c0_158], %409 {strides = array<i32>} : memref<16x32xf32, #tpu.memory_space<vmem>>, vector<16x32xf32>,
    %c0_159 = arith.constant 0 : index
    %c0_160 = arith.constant 0 : index
    %411 = vector.load %arg15[%c0_159, %c0_160] : memref<16x32xf32, #tpu.memory_space<vmem>>, vector<16x32xf32>
    %c0_161 = arith.constant 0 : index
    %c7 = arith.constant 7 : index
    %c0_162 = arith.constant 0 : index
    %412 = vector.load %arg14[%c0_161, %c7, %c0_162] : memref<1x10x32xf32, #tpu.memory_space<vmem>>, vector<1x1x32xf32>
    %413 = vector.shape_cast %412 : vector<1x1x32xf32> to vector<1x32xf32>
    %c0_163 = arith.constant 0 : index
    %c8_164 = arith.constant 8 : index
    %c0_165 = arith.constant 0 : index
    %414 = vector.load %arg14[%c0_163, %c8_164, %c0_165] : memref<1x10x32xf32, #tpu.memory_space<vmem>>, vector<1x1x32xf32>
    %415 = vector.shape_cast %414 : vector<1x1x32xf32> to vector<1x32xf32>
    %cst_166 = arith.constant dense<0.000000e+00> : vector<16xf32>
    %416 = vector.multi_reduction <add>, %411, %cst_166 [1] : vector<16x32xf32> to vector<16xf32>
    %417 = vector.shape_cast %416 : vector<16xf32> to vector<16x1xf32>
    %cst_167 = arith.constant 3.200000e+01 : f32
    %418 = vector.broadcast %cst_167 : f32 to vector<16x1xf32>
    %419 = arith.divf %417, %418 : vector<16x1xf32>
    %420 = vector.broadcast %419 : vector<16x1xf32> to vector<16x32xf32>
    %421 = arith.subf %411, %420 : vector<16x32xf32>
    %422 = arith.mulf %421, %421 : vector<16x32xf32>
    %cst_168 = arith.constant dense<0.000000e+00> : vector<16xf32>
    %423 = vector.multi_reduction <add>, %422, %cst_168 [1] : vector<16x32xf32> to vector<16xf32>
    %424 = vector.shape_cast %423 : vector<16xf32> to vector<16x1xf32>
    %cst_169 = arith.constant 3.200000e+01 : f32
    %425 = vector.broadcast %cst_169 : f32 to vector<16x1xf32>
    %426 = arith.divf %424, %425 : vector<16x1xf32>
    %427 = vector.broadcast %419 : vector<16x1xf32> to vector<16x32xf32>
    %428 = arith.subf %411, %427 : vector<16x32xf32>
    %cst_170 = arith.constant 9.99999974E-6 : f32
    %429 = vector.broadcast %cst_170 : f32 to vector<16x1xf32>
    %430 = arith.addf %426, %429 : vector<16x1xf32>
    %431 = math.rsqrt %430 : vector<16x1xf32>
    %432 = vector.broadcast %431 : vector<16x1xf32> to vector<16x32xf32>
    %433 = arith.mulf %428, %432 : vector<16x32xf32>
    %434 = vector.broadcast %413 : vector<1x32xf32> to vector<16x32xf32>
    %435 = arith.mulf %433, %434 : vector<16x32xf32>
    %436 = vector.broadcast %415 : vector<1x32xf32> to vector<16x32xf32>
    %437 = arith.addf %435, %436 : vector<16x32xf32>
    %438 = arith.truncf %437 : vector<16x32xf32> to vector<16x32xbf16>
    %c0_171 = arith.constant 0 : index
    %c0_172 = arith.constant 0 : index
    %c0_173 = arith.constant 0 : index
    %439 = vector.load %arg11[%c0_171, %c0_172, %c0_173] : memref<1x32x128xbf16, #tpu.memory_space<vmem>>, vector<1x32x128xbf16>
    %440 = vector.shape_cast %439 : vector<1x32x128xbf16> to vector<32x128xbf16>
    %cst_174 = arith.constant dense<0.000000e+00> : vector<16x128xf32>
    %441 = tpu.matmul %438, %440, %cst_174 {dimension_numbers = #tpu.dot_dimension_numbers<[1], [0], [0], [1], [0, 0, 1, 1], [], []>} : vector<16x32xbf16>, vector<32x128xbf16>, vector<16x128xf32> -> vector<16x128xf32>
    %c0_175 = arith.constant 0 : index
    %c0_176 = arith.constant 0 : index
    %c0_177 = arith.constant 0 : index
    %442 = vector.load %arg12[%c0_175, %c0_176, %c0_177] : memref<1x1x128xf32, #tpu.memory_space<vmem>>, vector<1x1x128xf32>
    %443 = vector.shape_cast %442 : vector<1x1x128xf32> to vector<1x128xf32>
    %444 = vector.broadcast %443 : vector<1x128xf32> to vector<16x128xf32>
    %445 = arith.addf %441, %444 : vector<16x128xf32>
    %cst_178 = arith.constant 5.000000e-01 : f32
    %446 = vector.broadcast %cst_178 : f32 to vector<16x128xf32>
    %447 = arith.mulf %446, %445 : vector<16x128xf32>
    %cst_179 = arith.constant 4.471500e-02 : f32
    %448 = vector.broadcast %cst_179 : f32 to vector<16x128xf32>
    %449 = arith.mulf %448, %445 : vector<16x128xf32>
    %450 = arith.mulf %449, %445 : vector<16x128xf32>
    %451 = arith.mulf %450, %445 : vector<16x128xf32>
    %452 = arith.addf %445, %451 : vector<16x128xf32>
    %cst_180 = arith.constant 0.797884583 : f32
    %453 = vector.broadcast %cst_180 : f32 to vector<16x128xf32>
    %454 = arith.mulf %453, %452 : vector<16x128xf32>
    %455 = math.tanh %454 : vector<16x128xf32>
    %cst_181 = arith.constant 1.000000e+00 : f32
    %456 = vector.broadcast %cst_181 : f32 to vector<16x128xf32>
    %457 = arith.addf %456, %455 : vector<16x128xf32>
    %458 = arith.mulf %447, %457 : vector<16x128xf32>
    %459 = arith.truncf %458 : vector<16x128xf32> to vector<16x128xbf16>
    %c0_182 = arith.constant 0 : index
    %c0_183 = arith.constant 0 : index
    %c0_184 = arith.constant 0 : index
    %460 = vector.load %arg13[%c0_182, %c0_183, %c0_184] : memref<1x128x32xbf16, #tpu.memory_space<vmem>>, vector<1x128x32xbf16>
    %461 = vector.shape_cast %460 : vector<1x128x32xbf16> to vector<128x32xbf16>
    %cst_185 = arith.constant dense<0.000000e+00> : vector<16x32xf32>
    %462 = tpu.matmul %459, %461, %cst_185 {dimension_numbers = #tpu.dot_dimension_numbers<[1], [0], [0], [1], [0, 0, 1, 1], [], []>} : vector<16x128xbf16>, vector<128x32xbf16>, vector<16x32xf32> -> vector<16x32xf32>
    %c0_186 = arith.constant 0 : index
    %c9 = arith.constant 9 : index
    %c0_187 = arith.constant 0 : index
    %463 = vector.load %arg14[%c0_186, %c9, %c0_187] : memref<1x10x32xf32, #tpu.memory_space<vmem>>, vector<1x1x32xf32>
    %464 = vector.shape_cast %463 : vector<1x1x32xf32> to vector<1x32xf32>
    %465 = vector.broadcast %464 : vector<1x32xf32> to vector<16x32xf32>
    %466 = arith.addf %462, %465 : vector<16x32xf32>
    %467 = arith.addf %411, %466 : vector<16x32xf32>
    %c0_188 = arith.constant 0 : index
    %c0_189 = arith.constant 0 : index
    %468 = vector.load %arg15[%c0_188, %c0_189] : memref<16x32xf32, #tpu.memory_space<vmem>>, vector<16x32xf32>
    tpu.vector_store %arg15[%c0_188, %c0_189], %467 {strides = array<i32>} : memref<16x32xf32, #tpu.memory_space<vmem>>, vector<16x32xf32>,
    return
  }
  func.func @transform_0(%arg0: i32) -> (i32, i32) {
    %c0_i32 = arith.constant 0 : i32
    %c0_i32_0 = arith.constant 0 : i32
    %c0_i32_1 = arith.constant 0 : i32
    return %c0_i32, %c0_i32_0 : i32, i32
  }
  func.func @transform_1(%arg0: i32) -> (i32, i32) {
    %c0_i32 = arith.constant 0 : i32
    %c0_i32_0 = arith.constant 0 : i32
    %c0_i32_1 = arith.constant 0 : i32
    return %c0_i32, %c0_i32_0 : i32, i32
  }
  func.func @transform_2(%arg0: i32) -> (i32, i32) {
    %c0_i32 = arith.constant 0 : i32
    %c0_i32_0 = arith.constant 0 : i32
    %c0_i32_1 = arith.constant 0 : i32
    return %c0_i32, %c0_i32_0 : i32, i32
  }
  func.func @transform_3(%arg0: i32) -> (i32, i32, i32) {
    %c0_i32 = arith.constant 0 : i32
    %c0_i32_0 = arith.constant 0 : i32
    %c0_i32_1 = arith.constant 0 : i32
    return %arg0, %c0_i32, %c0_i32_0 : i32, i32, i32
  }
  func.func @transform_4(%arg0: i32) -> (i32, i32, i32) {
    %c0_i32 = arith.constant 0 : i32
    %c0_i32_0 = arith.constant 0 : i32
    %c0_i32_1 = arith.constant 0 : i32
    return %arg0, %c0_i32, %c0_i32_0 : i32, i32, i32
  }
  func.func @transform_5(%arg0: i32) -> (i32, i32, i32) {
    %c0_i32 = arith.constant 0 : i32
    %c0_i32_0 = arith.constant 0 : i32
    %c0_i32_1 = arith.constant 0 : i32
    return %arg0, %c0_i32, %c0_i32_0 : i32, i32, i32
  }
  func.func @transform_6(%arg0: i32) -> (i32, i32, i32) {
    %c0_i32 = arith.constant 0 : i32
    %c0_i32_0 = arith.constant 0 : i32
    %c0_i32_1 = arith.constant 0 : i32
    return %arg0, %c0_i32, %c0_i32_0 : i32, i32, i32
  }
  func.func @transform_7(%arg0: i32) -> (i32, i32, i32) {
    %c0_i32 = arith.constant 0 : i32
    %c0_i32_0 = arith.constant 0 : i32
    %c0_i32_1 = arith.constant 0 : i32
    return %arg0, %c0_i32, %c0_i32_0 : i32, i32, i32
  }
  func.func @transform_8(%arg0: i32) -> (i32, i32, i32) {
    %c0_i32 = arith.constant 0 : i32
    %c0_i32_0 = arith.constant 0 : i32
    %c0_i32_1 = arith.constant 0 : i32
    return %arg0, %c0_i32, %c0_i32_0 : i32, i32, i32
  }
  func.func @transform_9(%arg0: i32) -> (i32, i32, i32) {
    %c0_i32 = arith.constant 0 : i32
    %c0_i32_0 = arith.constant 0 : i32
    %c0_i32_1 = arith.constant 0 : i32
    return %arg0, %c0_i32, %c0_i32_0 : i32, i32, i32
  }
  func.func @transform_10(%arg0: i32) -> (i32, i32, i32) {
    %c0_i32 = arith.constant 0 : i32
    %c0_i32_0 = arith.constant 0 : i32
    %c0_i32_1 = arith.constant 0 : i32
    return %arg0, %c0_i32, %c0_i32_0 : i32, i32, i32
  }
  func.func @transform_11(%arg0: i32) -> (i32, i32, i32) {
    %c0_i32 = arith.constant 0 : i32
    %c0_i32_0 = arith.constant 0 : i32
    %c0_i32_1 = arith.constant 0 : i32
    return %arg0, %c0_i32, %c0_i32_0 : i32, i32, i32
  }
  func.func @transform_12(%arg0: i32) -> (i32, i32, i32) {
    %c0_i32 = arith.constant 0 : i32
    %c0_i32_0 = arith.constant 0 : i32
    %c0_i32_1 = arith.constant 0 : i32
    return %arg0, %c0_i32, %c0_i32_0 : i32, i32, i32
  }
  func.func @transform_13(%arg0: i32) -> (i32, i32, i32) {
    %c0_i32 = arith.constant 0 : i32
    %c0_i32_0 = arith.constant 0 : i32
    %c0_i32_1 = arith.constant 0 : i32
    return %arg0, %c0_i32, %c0_i32_0 : i32, i32, i32
  }
  func.func @transform_14(%arg0: i32) -> (i32, i32) {
    %c0_i32 = arith.constant 0 : i32
    %c0_i32_0 = arith.constant 0 : i32
    %c0_i32_1 = arith.constant 0 : i32
    return %c0_i32, %c0_i32_0 : i32, i32
  }
}

</mosaic_0001>

<bundles_post_ra>
// kernel: tpu_custom_call.1
= control target key start
LH: loop header
LB: loop body
LE: loop exit
PB: predicated region body
PF: predicated region fallthrough
CT: control target
= control target key end

     0   :  { %s3473_s0 = inlined_call_operand.hbm [shape: f32[16,32], index: 0, kind: input, shape index: {}, may-alias: {0,14}]   ;;  %s3474_s1 = inlined_call_operand.hbm [shape: bf16[32,32], index: 1, kind: input, shape index: {}]   ;;  %s3475_s2 = inlined_call_operand.hbm [shape: f32[8,8], index: 2, kind: input, shape index: {}]   ;;  %s3476_s3 = inlined_call_operand.vmem [shape: bf16[2,32,96], index: 3, kind: input, shape index: {}]   ;;  %s3477_s4 = inlined_call_operand.vmem [shape: f32[2,1,96], index: 4, kind: input, shape index: {}]   ;;  %s3478_s5 = inlined_call_operand.vmem [shape: bf16[2,32,32], index: 5, kind: input, shape index: {}]   ;;  %s3479_s6 = inlined_call_operand.vmem [shape: bf16[2,32,32], index: 6, kind: input, shape index: {}]   ;;  %s3480_s7 = inlined_call_operand.vmem [shape: bf16[2,32,64], index: 7, kind: input, shape index: {}]   ;;  %s3481_s8 = inlined_call_operand.vmem [shape: f32[2,1,64], index: 8, kind: input, shape index: {}]   ;;  %s3482_s9 = inlined_call_operand.vmem [shape: bf16[2,32,32], index: 9, kind: input, shape index: {}]   ;;  %s3483_s10 = inlined_call_operand.vmem [shape: bf16[2,32,128], index: 10, kind: input, shape index: {}]   ;;  %s3484_s11 = inlined_call_operand.vmem [shape: f32[2,1,128], index: 11, kind: input, shape index: {}]   ;;  %s3485_s12 = inlined_call_operand.vmem [shape: bf16[2,128,32], index: 12, kind: input, shape index: {}]   ;;  %s3486_s13 = inlined_call_operand.vmem [shape: f32[2,10,32], index: 13, kind: input, shape index: {}]   ;;  %s3487_s14 = inlined_call_operand.hbm [shape: f32[16,32], index: 14, kind: output, shape index: {}, may-alias: {0,14}]  }
   0x1   :  { %3488 = sst [smem:[#allocation13_spill]] %s3473_s0 }
   0x2   :  { %3489 = sst [smem:[#allocation14_spill]] %s3474_s1 }
   0x3   :  { %3490 = sst [smem:[#allocation15_spill]] %s3475_s2 }
   0x4   :  { %3491 = sst [smem:[#allocation16_spill]] %s3476_s3 }
   0x5   :  { %3492 = sst [smem:[#allocation17_spill]] %s3478_s5 }
   0x6   :  { %3493 = sst [smem:[#allocation18_spill]] %s3479_s6 }
   0x7   :  { %3494 = sst [smem:[#allocation19_spill]] %s3480_s7 }
   0x8   :  { %19 = vsyncpa [#allocation4], 0 }
   0x9   :  { %20 = vsyncpa [#allocation7], 0 }
   0xa   :  { %21 = vsyncpa [#allocation5], 0  ;;  %s3008_s29 = smov 0  }
   0xb LB: > { %s3495_s1 = sld [smem:[#allocation14_spill]]  ;;  %s3017_s17 = sadd.s32 4294967295, %s2907_s29   ;;  %s2907_s29 = sphi %s3008_s29, %s27_s29  }
   0xc   : > { %p2413_p0 = scmp.ge.s32.totalorder %s2907_s29, 1  ;;  %p402_p1 = scmp.lt.s32.totalorder %s2907_s29, 3 }
   0xd   : > { %p2414_p2 = scmp.ne.s32.totalorder %s3017_s17, 0  ;;  %p2636_p3 = scmp.eq.s32.totalorder %s3017_s17, 0 }
   0xe   : > { %p3023_p4 = pnand %p2413_p0, %p402_p1  ;;  %s2909_s19 = smov [#allocation6]  }
   0xf   : > { %s429_s20 = sshll.u32 %s2909_s19, 4  ;;  %s3497_s0 = sld [smem:[#allocation13_spill]]  ;;  %s430_s20 = int_to_ptr.vmem [resolvable:$true] %s429_s20 }
  0x10   : > { %p2626_p5 = pneg %p3023_p4  ;;  %s2910_s25 = smov [#allocation3]  }
  0x11   : > { %s427_s16 = sshll.u32 %s3495_s1, 4  ;;  %s415_s26 = sshll.u32 %s2910_s25, 4  ;;  %s428_s16 = int_to_ptr.hbm [resolvable:$true] %s427_s16  ;;  %s416_s26 = int_to_ptr.vmem [resolvable:$true] %s415_s26 }
  0x12   : > { %p3034_p6 = pnand %p2636_p3, %p2626_p5  ;;  %s2911_s27 = smov 64  }
  0x13   : > { %s2912_s28 = smov 4   ;;  %s3499_s2 = sld [smem:[#allocation15_spill]] }
  0x14   : > { %2632 = dma.hbm_to_vmem [thread:$0]  (!%p3034_p6), %s428_s16, 256, %s430_s20, [#allocation7], %s2911_s27, %s2911_s27, %s2912_s28  }
  0x15   : > { %s413_s23 = sshll.u32 %s3497_s0, 4  ;;  %s2913_s21 = smov 128   ;;  %s414_s23 = int_to_ptr.hbm [resolvable:$true] %s413_s23 }
  0x16   : > { %s2914_s22 = smov 8   ;;  %s2915_s0 = smov [#allocation8]  }
  0x17   : > { %2629 = dma.hbm_to_vmem [thread:$0]  (!%p3034_p6), %s414_s23, 256, %s416_s26, [#allocation4], %s2913_s21, %s2913_s21, %s2914_s22  }
  0x18   : > { %s444_s1 = sshll.u32 %s2915_s0, 4  ;;  %539 = sbr.rel (%p3023_p4) target bundleno = 4089 (0xff9), region = 76  ;;  %s445_s1 = int_to_ptr.vmem [resolvable:$true] %s444_s1 }
  0x19   : > { %s442_s19 = sshll.u32 %s3499_s2, 4  ;;  %s443_s19 = int_to_ptr.hbm [resolvable:$true] %s442_s19 }
  0x1a   : > { %2635 = dma.hbm_to_vmem [thread:$0]  (!%p3034_p6), %s443_s19, 128, %s445_s1, [#allocation7]  }
  0x1d   : > { %2894 = dma.done.wait (%p2636_p3), [#allocation4], 256  }
  0x1e   : > { %2896 = vsyncadd (%p2636_p3), [#allocation4], 4294967040 }
  0x1f   : > { %2898 = dma.done.wait (%p2636_p3), [#allocation7], 384  }
  0x20   : > { %2900 = vsyncadd (%p2636_p3), [#allocation7], 4294966912  ;;  %p635_p7 = scmp.lt.s32.totalorder %s3017_s17, 1  ;;  %s3500_s3 = sld [smem:[#allocation16_spill]] }
  0x21   : > { %s3501_s5 = sld [smem:[#allocation17_spill]] }
  0x22   : > { %s3059_s0 = scalar_select %p635_p7, %s3017_s17, 1 }
  0x23   : > { %s3502_s6 = sld [smem:[#allocation18_spill]] }
  0x24   : > { %s2578_s1 = sshll.u32 %s3059_s0, 4  ;;  %s3503_s7 = sld [smem:[#allocation19_spill]] }
  0x25   : > { %s3093_s26 = scalar_lea.vmem %s3482_s9, %s2578_s1  ;;  %s3098_s30 = scalar_lea.vmem %s3483_s10, %s2578_s1 }
  0x26   : > { %s3069_s25 = scalar_lea.vmem %s3500_s3, %s2578_s1  ;;  %s673_s21 = scalar_lea.vmem %s3484_s11, %s3059_s0 }
  0x27   : > { %s3074_s28 = scalar_lea.vmem %s3501_s5, %s2578_s1  ;;  %s2584_s22 = sshll.u32 %s3059_s0, 6 }
  0x28   : > { %s3108_s20 = scalar_lea.vmem %s3486_s13, %s2578_s1  ;;  %s3113_s2 = scalar_lea.vmem %s3485_s12, %s2584_s22 }
  0x29   : > { %s3079_s19 = scalar_lea.vmem %s3502_s6, %s2578_s1  ;;  %688 = sbr.rel (%p2414_p2) target bundleno = 49 (0x31), region = 92 }
  0x2a   : > { %s3084_s16 = scalar_lea.vmem %s3503_s7, %s2578_s1 }
  0x2e   : > { %v689_v0 = vld [vmem:[#allocation3] sm:$0xff]  ;;  %vm691_vm0 = vcmask 261120   ;;  %v690_v1 = vld [vmem:[#allocation3 + $0x8] sm:$0xff] }
  0x2f   : > { %692 = vst.msk [vmem:[#allocation9] sm:$0xff] %vm691_vm0, %v689_v0 }
  0x30   : > { %693 = vst.msk [vmem:[#allocation9 + $0x8] sm:$0xff] %vm691_vm0, %v690_v1 }
  0x31 PF: > { %vm699_vm1 = vcmask 261120   ;;  %v2916_v6 = vmov 32.0   ;;  %v2587_v23 = vld [vmem:[%s3069_s25 + $0x8] sm:$0xff]  ;;  %v2586_v25 = vld [vmem:[%s3069_s25] sm:$0xff]  ;;  %s3504_s6 = scalar_lea.vmem %s3477_s4, %s3059_s0  ;;  %s2917_s7 = smov 88   ;;  %vm802_vm9 = vcmask 64512  }
  0x32   : > { %2689 = vrcp.f32 %v2916_v6  ;;  %787 = vmatpush.bf16.msra.mxu0 %v2587_v23  ;;  %v2676_v44 = vld [vmem:[%s3108_s20] ss:$0 sm:$0xff]  ;;  %v2677_v49 = vld [vmem:[%s3108_s20 + $0x1] ss:$0 sm:$0xff]  ;;  %s2918_s1 = smov 64   ;;  %s2919_s25 = smov 96  }
  0x33   : > { %v2678_v54 = vld [vmem:[%s3504_s6] ss:$0 sm:$0xff]  ;;  %s2920_s23 = smov 120   ;;  %s2921_s24 = smov 104   ;;  %vm839_vm10 = vcmask 1043456   ;;  %vm857_vm11 = vcmask 60416  }
  0x34   : > { %s2922_s27 = smov 112   ;;  %s2923_s15 = smov 80   ;;  %vm920_vm12 = vcmask 126016   ;;  %vm983_vm13 = vcmask 191616   ;;  %vm1046_vm14 = vcmask 257216  }
  0x35   : > { %s2924_s22 = smov 72   ;;  %s2925_s18 = smov 48  }
  0x36   : > { %v3117_v2 = vld [vmem:[#allocation9] sm:$0xff]  ;;  %788 = vmatpush.bf16.msra.mxu0 %v2586_v25  ;;  %s2926_s3 = smov 56   ;;  %s2927_s5 = smov 40  }
  0x37   : > { %v700_v3 = vsel %vm699_vm1, %v3117_v2, 0.0  ;;  %v3121_v4 = vld [vmem:[#allocation9 + $0x8] sm:$0xff]  ;;  %s2928_s6 = smov 8   ;;  %p2642_p8 = scmp.eq.s32.totalorder %s3017_s17, 1 }
  0x38   : > { %701 = vadd.xlane.f32.xlu0 %v700_v3  ;;  %v703_v5 = vsel %vm699_vm1, %v3121_v4, 0.0  ;;  %v2690_v7 = vpop.eup %2689 }
  0x39   : > { %v707_v8 = vmul.f32 32.0, %v2690_v7  ;;  %vm711_vm2 = vweird.f32 %v2690_v7 }
  0x3b   : > { %v708_v9 = vsub.f32 1.0, %v707_v8 }
  0x3d   : > { %v709_v10 = vmul.f32 %v2690_v7, %v708_v9  ;;  %v3169_v9 = vld [vmem:[#allocation8] sm:$0xff] }
  0x3f   : > { %v710_v11 = vadd.f32 %v2690_v7, %v709_v10 }
  0x40   : > { %704 = vadd.xlane.f32.xlu0 %v703_v5 }
  0x41   : > { %v3125_v12 = vsel %vm711_vm2, %v2690_v7, %v710_v11 }
  0xab   : > { %v702_v13 = vpop.xlane.xlu0 %701 }
  0xac   : > { %v713_v14 = vmul.f32 %v3125_v12, %v702_v13 }
  0xae   : > { %v715_v15 = vsub.f32 %v3117_v2, %v713_v14 }
  0xb0   : > { %v717_v16 = vmul.f32 %v715_v15, %v715_v15 }
  0xb2   : > { %v719_v17 = vsel %vm699_vm1, %v717_v16, 0.0 }
  0xb3   : > { %720 = vadd.xlane.f32.xlu1 %v719_v17  ;;  %v705_v18 = vpop.xlane.xlu0 %704 }
  0xb4   : > { %v714_v19 = vmul.f32 %v3125_v12, %v705_v18 }
  0xb6   : > { %v716_v20 = vsub.f32 %v3121_v4, %v714_v19 }
  0xb8   : > { %v718_v21 = vmul.f32 %v716_v20, %v716_v20 }
  0xba   : > { %v722_v22 = vsel %vm699_vm1, %v718_v21, 0.0 }
  0xbb   : > { %723 = vadd.xlane.f32.xlu1 %v722_v22 }
 0x126   : > { %v721_v24 = vpop.xlane.xlu1 %720 }
 0x127   : > { %v725_v26 = vmul.f32 %v721_v24, %v3125_v12 }
 0x129   : > { %v727_v27 = vadd.f32 1e-05, %v725_v26 }
 0x12b   : > { %2691 = vrsqrt.f32 %v727_v27  ;;  %vm735_vm4 = vweird.f32 %v727_v27 }
 0x12e   : > { %v724_v28 = vpop.xlane.xlu1 %723 }
 0x12f   : > { %v726_v29 = vmul.f32 %v724_v28, %v3125_v12 }
 0x131   : > { %v2692_v30 = vpop.eup %2691  ;;  %v728_v31 = vadd.f32 1e-05, %v726_v29 }
 0x132   : > { %v730_v32 = vmul.f32 %v2692_v30, %v727_v27  ;;  %vm736_vm3 = vweird.f32 %v2692_v30 }
 0x133   : > { %2693 = vrsqrt.f32 %v728_v31  ;;  %vm737_vm5 = vmor %vm735_vm4, %vm736_vm3  ;;  %vm745_vm7 = vweird.f32 %v728_v31 }
 0x134   : > { %v731_v33 = vmul.f32 %v2692_v30, %v730_v32 }
 0x136   : > { %v732_v34 = vmul.f32 0.5, %v731_v33 }
 0x138   : > { %v733_v35 = vsub.f32 1.5, %v732_v34 }
 0x139   : > { %v2694_v36 = vpop.eup %2693 }
 0x13a   : > { %v734_v37 = vmul.f32 %v2692_v30, %v733_v35  ;;  %v740_v38 = vmul.f32 %v2694_v36, %v728_v31  ;;  %vm746_vm6 = vweird.f32 %v2694_v36 }
 0x13b   : > { %vm747_vm8 = vmor %vm745_vm7, %vm746_vm6  ;;  %vm1520_vm6 = vcmask 130048  }
 0x13c   : > { %v741_v39 = vmul.f32 %v2694_v36, %v740_v38  ;;  %v738_v40 = vsel %vm737_vm5, %v2692_v30, %v734_v37 }
 0x13d   : > { %v749_v43 = vmul.f32 %v738_v40, %v715_v15 }
 0x13e   : > { %v742_v41 = vmul.f32 0.5, %v741_v39 }
 0x13f   : > { %v752_v48 = vmul.f32 %v2676_v44, %v749_v43 }
 0x140   : > { %v743_v42 = vsub.f32 1.5, %v742_v41 }
 0x141   : > { %v755_v51 = vadd.f32 %v2677_v49, %v752_v48 }
 0x142   : > { %v744_v45 = vmul.f32 %v2694_v36, %v743_v42 }
 0x144   : > { %v748_v46 = vsel %vm747_vm8, %v2694_v36, %v744_v45 }
 0x145   : > { %v750_v47 = vmul.f32 %v748_v46, %v716_v20 }
 0x147   : > { %v753_v50 = vmul.f32 %v2676_v44, %v750_v47 }
 0x149   : > { %v756_v52 = vadd.f32 %v2677_v49, %v753_v50 }
 0x14b   : > { %v757_v53 = vpack.c.bf16 %v756_v52, %v755_v51 }
 0x14d   : > { %2447 = vmatmul.msk.bf16.vlgmr.msra.gmra.mxu0 %vm699_vm1, %v757_v53 }
 0x1ca   : > { %v790_v55 = vpop.f32.mrf.mxu0 }
 0x1cb   : > { %v791_v56 = vadd.f32 %v2678_v54, %v790_v55 }
 0x1cd   : > { %v795_v57 = vpack.c.bf16 %v791_v56, %v791_v56 }
 0x1cf   : > { %v798_v58 = vunpack.c.l.b16 %v795_v57 }
 0x1d1   : > { %v3145_v59 = vpack.c.b16 %v798_v58, %v798_v58 }
 0x1d2   : > { %v792_v60 = vpop.f32.mrf.mxu0 }
 0x1d3   : > { %861 = vrot.lane.b32.xlu0 %v3145_v59, %s2917_s7  ;;  %834 = vrot.lane.b32.xlu1 %v3145_v59, %s2918_s1  ;;  %v793_v61 = vadd.f32 %v2678_v54, %v792_v60 }
 0x1d4   : > { %800 = vrot.lane.b32.xlu2 %v3145_v59, %s2919_s25 }
 0x1d5   : > { %v796_v62 = vpack.c.bf16 %v793_v61, %v793_v61 }
 0x1d7   : > { %v1049_v63 = vunpack.c.l.b16 %v796_v62 }
 0x1d9   : > { %v3159_v0 = vpack.c.b16 %v1049_v63, %v1049_v63 }
 0x1db   : > { %859 = vrot.lane.b32.xlu1 %v3145_v59, %s2920_s23 }
 0x1e3   : > { %985 = vrot.lane.b32.xlu1 %v3145_v59, %s2921_s24 }
 0x1eb   : > { %922 = vrot.lane.b32.xlu1 %v3145_v59, %s2922_s27 }
 0x1f3   : > { %1051 = vrot.lane.b32.xlu1 %v3159_v0, %s2919_s25 }
 0x1fb   : > { %1231 = vrot.lane.b32.xlu1 %v3159_v0, %s2921_s24 }
 0x22e   : > { %v801_v1 = vpop.permute.xlu2 %800 }
 0x22f   : > { %v807_v3 = vsel %vm802_vm9, %v801_v1, 0 }
 0x230   : > { %816 = vmatpush.bf16.xpose.msra.mxu1 %v807_v3 }
 0x237   : > { %2448 = vmatmul.msk.bf16.vlgmr.msra.gmra.mxu1 %vm802_vm9, %v795_v57 }
 0x245   : > { %v862_v5 = vpop.permute.xlu0 %861  ;;  %v835_v6 = vpop.permute.xlu1 %834 }
 0x246   : > { %v841_v7 = vsel %vm839_vm10, %v835_v6, 0  ;;  %v867_v8 = vsel %vm802_vm9, %v862_v5, 0 }
 0x247   : > { %850 = vmatpush.bf16.msra.mxu2 %v841_v7 }
 0x24b   : > { %876 = vmatpush.bf16.xpose.msrb.mxu2 %v867_v8 }
 0x24d   : > { %v860_v15 = vpop.permute.xlu1 %859 }
 0x255   : > { %v986_v16 = vpop.permute.xlu1 %985 }
 0x25d   : > { %v923_v17 = vpop.permute.xlu1 %922 }
 0x265   : > { %v1052_v21 = vpop.permute.xlu1 %1051 }
 0x266   : > { %v1057_v24 = vsel %vm802_vm9, %v1052_v21, 0 }
 0x26d   : > { %v1232_v47 = vpop.permute.xlu1 %1231 }
 0x2b4   : > { %v818_v10 = vpop.f32.mrf.mxu1 }
 0x2b5   : > { %v819_v11 = vadd.f32 %v818_v10, %v3169_v9 }
 0x2b7   : > { %v822_v13 = vsel %vm802_vm9, %v819_v11, -inf }
 0x2b8   : > { %823 = vmax.xlane.f32.xlu2 %v822_v13 }
 0x2bc   : > { %v820_v14 = vpop.f32.mrf.mxu1 }
 0x2d0   : > { %924 = vrot.lane.b32.xlu2 %v3145_v59, %s2923_s15 }
 0x2d8   : > { %1171 = vrot.lane.b32.xlu2 %v3159_v0, %s2923_s15 }
 0x32b   : > { %v824_v18 = vpop.xlane.xlu2 %823 }
 0x32c   : > { %v825_v19 = vsub.f32 %v819_v11, %v824_v18 }
 0x32e   : > { %v826_v20 = vmul.f32 1.442695, %v825_v19 }
 0x330   : > { %2695 = vpow2.f32 %v826_v20 }
 0x333   : > { %v925_v22 = vpop.permute.xlu2 %924 }
 0x334   : > { %v930_v23 = vsel %vm802_vm9, %v925_v22, 0 }
 0x335   : > { %939 = vmatpush.bf16.xpose.msrb.mxu0 %v930_v23 }
 0x336   : > { %v2696_v25 = vpop.eup %2695 }
 0x337   : > { %v828_v26 = vsel %vm802_vm9, %v2696_v25, 0.0 }
 0x338   : > { %829 = vadd.xlane.f32.xlu0 %v828_v26 }
 0x33b   : > { %v1172_v27 = vpop.permute.xlu2 %1171 }
 0x33c   : > { %v1177_v28 = vsel %vm802_vm9, %v1172_v27, 0  ;;  %2452 = vmatmul.msk.bf16.vlgmr.msrb.gmra.mxu0 %vm802_vm9, %v923_v17 }
 0x33d   : > { %1066 = vmatpush.bf16.xpose.msra.mxu0 %v1057_v24 }
 0x345   : > { %1186 = vmatpush.bf16.xpose.msrb.mxu0 %v1177_v28 }
 0x34c   : > { %987 = vrot.lane.b32.xlu0 %v3145_v59, %s2924_s22  ;;  %2456 = vmatmul.msk.bf16.vlgmr.msra.gmra.mxu0 %vm802_vm9, %v796_v62 }
 0x354   : > { %1109 = vrot.lane.b32.xlu0 %v3159_v0, %s2917_s7 }
 0x35c   : > { %1107 = vrot.lane.b32.xlu0 %v3159_v0, %s2920_s23 }
 0x364   : > { %1233 = vrot.lane.b32.xlu0 %v3159_v0, %s2924_s22 }
 0x36c   : > { %1169 = vrot.lane.b32.xlu0 %v3159_v0, %s2922_s27 }
 0x3ab   : > { %v830_v29 = vpop.xlane.xlu0 %829 }
 0x3ac   : > { %2697 = vrcp.f32 %v830_v29 }
 0x3b2   : > { %v2698_v30 = vpop.eup %2697 }
 0x3b3   : > { %v832_v31 = vmul.f32 %v2698_v30, %v2696_v25 }
 0x3b5   : > { %v833_v32 = vpack.c.bf16 %v832_v31, %v832_v31 }
 0x3b7   : > { %2449 = vmatmul.msk.bf16.vlgmr.msra.gmra.mxu2 %vm802_vm9, %v833_v32 }
 0x3b9   : > { %v941_v33 = vpop.f32.mrf.mxu0 }
 0x3ba   : > { %v942_v34 = vadd.f32 %v941_v33, %v3169_v9 }
 0x3bc   : > { %v945_v35 = vsel %vm802_vm9, %v942_v34, -inf }
 0x3bd   : > { %946 = vmax.xlane.f32.xlu0 %v945_v35 }
 0x3be   : > { %v988_v36 = vpop.permute.xlu0 %987 }
 0x3bf   : > { %v993_v37 = vsel %vm802_vm9, %v988_v36, 0 }
 0x3c0   : > { %1002 = vmatpush.bf16.xpose.msra.mxu3 %v993_v37 }
 0x3c1   : > { %v943_v38 = vpop.f32.mrf.mxu0 }
 0x3c6   : > { %v1110_v39 = vpop.permute.xlu0 %1109 }
 0x3c7   : > { %2450 = vmatmul.msk.bf16.vlgmr.msrb.gmra.mxu2 %vm802_vm9, %v860_v15  ;;  %2454 = vmatmul.msk.bf16.vlgmr.msra.gmra.mxu3 %vm802_vm9, %v986_v16  ;;  %v1115_v40 = vsel %vm802_vm9, %v1110_v39, 0 }
 0x3c8   : > { %1124 = vmatpush.bf16.xpose.msrb.mxu3 %v1115_v40 }
 0x3c9   : > { %v1068_v41 = vpop.f32.mrf.mxu0 }
 0x3ca   : > { %v3210_v57 = vadd.f32 %v1068_v41, %v3169_v9 }
 0x3cc   : > { %v1072_v62 = vsel %vm802_vm9, %v3210_v57, -inf }
 0x3ce   : > { %v1108_v42 = vpop.permute.xlu0 %1107 }
 0x3d1   : > { %v1070_v43 = vpop.f32.mrf.mxu0 }
 0x3d6   : > { %v1234_v44 = vpop.permute.xlu0 %1233 }
 0x3d7   : > { %v1239_v45 = vsel %vm802_vm9, %v1234_v44, 0  ;;  %2458 = vmatmul.msk.bf16.vlgmr.msrb.gmra.mxu3 %vm802_vm9, %v1108_v42 }
 0x3d8   : > { %1248 = vmatpush.bf16.xpose.msra.mxu3 %v1239_v45 }
 0x3de   : > { %v1170_v46 = vpop.permute.xlu0 %1169 }
 0x3df   : > { %2460 = vmatmul.msk.bf16.vlgmr.msrb.gmra.mxu0 %vm802_vm9, %v1170_v46 }
 0x3e7   : > { %2462 = vmatmul.msk.bf16.vlgmr.msra.gmra.mxu3 %vm802_vm9, %v1232_v47 }
 0x430   : > { %v947_v61 = vpop.xlane.xlu0 %946 }
 0x431   : > { %v948_v63 = vsub.f32 %v942_v34, %v947_v61 }
 0x433   : > { %v949_v1 = vmul.f32 1.442695, %v948_v63 }
 0x435   : > { %2699 = vpow2.f32 %v949_v1 }
 0x43a   : > { %v852_v48 = vpop.f32.mrf.mxu2 }
 0x43b   : > { %v856_v49 = vpack.c.bf16 %v852_v48, %v852_v48  ;;  %v2700_v13 = vpop.eup %2699 }
 0x43c   : > { %v951_v15 = vsel %vm802_vm9, %v2700_v13, 0.0 }
 0x43d   : > { %858 = vst.msk [vmem:[#allocation2] sm:$0xf] %vm857_vm11, %v856_v49 }
 0x442   : > { %v854_v50 = vpop.f32.mrf.mxu2 }
 0x44a   : > { %v878_v51 = vpop.f32.mrf.mxu2  ;;  %v1004_v52 = vpop.f32.mrf.mxu3 }
 0x44b   : > { %v879_v53 = vadd.f32 %v878_v51, %v3169_v9  ;;  %v1005_v54 = vadd.f32 %v1004_v52, %v3169_v9 }
 0x44d   : > { %v882_v55 = vsel %vm802_vm9, %v879_v53, -inf  ;;  %v1008_v56 = vsel %vm802_vm9, %v1005_v54, -inf }
 0x44e   : > { %883 = vmax.xlane.f32.xlu1 %v882_v55  ;;  %1009 = vmax.xlane.f32.xlu2 %v1008_v56 }
 0x452   : > { %v880_v58 = vpop.f32.mrf.mxu2  ;;  %v1006_v60 = vpop.f32.mrf.mxu3 }
 0x456   : > { %1073 = vmax.xlane.f32.xlu1 %v1072_v62 }
 0x45a   : > { %v1126_v3 = vpop.f32.mrf.mxu3 }
 0x45b   : > { %v1127_v5 = vadd.f32 %v1126_v3, %v3169_v9 }
 0x45c   : > { %v1188_v6 = vpop.f32.mrf.mxu0 }
 0x45d   : > { %v1189_v7 = vadd.f32 %v1188_v6, %v3169_v9  ;;  %v1130_v8 = vsel %vm802_vm9, %v1127_v5, -inf }
 0x45e   : > { %1131 = vmax.xlane.f32.xlu2 %v1130_v8 }
 0x45f   : > { %v1192_v10 = vsel %vm802_vm9, %v1189_v7, -inf }
 0x460   : > { %1193 = vmax.xlane.f32.xlu1 %v1192_v10 }
 0x462   : > { %v1128_v11 = vpop.f32.mrf.mxu3 }
 0x464   : > { %v1190_v14 = vpop.f32.mrf.mxu0 }
 0x468   : > { %952 = vadd.xlane.f32.xlu1 %v951_v15 }
 0x46a   : > { %v1250_v16 = vpop.f32.mrf.mxu3 }
 0x46b   : > { %v1251_v17 = vadd.f32 %v1250_v16, %v3169_v9 }
 0x46d   : > { %v1254_v18 = vsel %vm802_vm9, %v1251_v17, -inf }
 0x46e   : > { %1255 = vmax.xlane.f32.xlu0 %v1254_v18 }
 0x472   : > { %v1252_v19 = vpop.f32.mrf.mxu3 }
 0x481   : > { %957 = vrot.lane.b32.xlu1 %v3145_v59, %s2925_s18 }
 0x482   : > { %894 = vrot.lane.b32.xlu0 %v3145_v59, %s2926_s3 }
 0x489   : > { %1142 = vrot.lane.b32.xlu1 %v3159_v0, %s2926_s3  ;;  %s3505_s3 = scalar_lea.vmem %s3481_s8, %s3059_s0  ;;  %s2931_s0 = smov [#allocation9]  }
 0x491   : > { %1084 = vrot.lane.b32.xlu1 %v3159_v0, %s2918_s1  ;;  %s2929_s1 = smov 16  }
 0x4c1   : > { %v884_v20 = vpop.xlane.xlu1 %883  ;;  %v1010_v21 = vpop.xlane.xlu2 %1009 }
 0x4c2   : > { %v1011_v22 = vsub.f32 %v1005_v54, %v1010_v21  ;;  %v885_v23 = vsub.f32 %v879_v53, %v884_v20 }
 0x4c4   : > { %v1012_v9 = vmul.f32 1.442695, %v1011_v22  ;;  %v886_v24 = vmul.f32 1.442695, %v885_v23 }
 0x4c6   : > { %2701 = vpow2.f32 %v1012_v9 }
 0x4c7   : > { %2703 = vpow2.f32 %v886_v24 }
 0x4c9   : > { %v1074_v25 = vpop.xlane.xlu1 %1073 }
 0x4cc   : > { %v3227_v26 = vpop.eup %2701 }
 0x4cd   : > { %v1014_v27 = vsel %vm802_vm9, %v3227_v26, 0.0  ;;  %v2704_v30 = vpop.eup %2703 }
 0x4ce   : > { %1015 = vadd.xlane.f32.xlu2 %v1014_v27  ;;  %v888_v34 = vsel %vm802_vm9, %v2704_v30, 0.0 }
 0x4d1   : > { %v1132_v28 = vpop.xlane.xlu2 %1131 }
 0x4d2   : > { %v1133_v29 = vsub.f32 %v1127_v5, %v1132_v28 }
 0x4d3   : > { %v1194_v31 = vpop.xlane.xlu1 %1193 }
 0x4d4   : > { %v1134_v32 = vmul.f32 1.442695, %v1133_v29  ;;  %v1195_v33 = vsub.f32 %v1189_v7, %v1194_v31 }
 0x4d6   : > { %2705 = vpow2.f32 %v1134_v32  ;;  %889 = vadd.xlane.f32.xlu2 %v888_v34  ;;  %v1196_v35 = vmul.f32 1.442695, %v1195_v33 }
 0x4d8   : > { %2707 = vpow2.f32 %v1196_v35 }
 0x4db   : > { %v953_v43 = vpop.xlane.xlu1 %952 }
 0x4dc   : > { %v3232_v36 = vpop.eup %2705 }
 0x4dd   : > { %v1136_v37 = vsel %vm802_vm9, %v3232_v36, 0.0 }
 0x4de   : > { %1137 = vadd.xlane.f32.xlu0 %v1136_v37  ;;  %v3236_v39 = vpop.eup %2707 }
 0x4df   : > { %v1198_v42 = vsel %vm802_vm9, %v3236_v39, 0.0 }
 0x4e1   : > { %v1256_v38 = vpop.xlane.xlu0 %1255 }
 0x4e2   : > { %v1257_v40 = vsub.f32 %v1251_v17, %v1256_v38 }
 0x4e4   : > { %v1258_v41 = vmul.f32 1.442695, %v1257_v40 }
 0x4e6   : > { %2709 = vpow2.f32 %v1258_v41  ;;  %1199 = vadd.xlane.f32.xlu0 %v1198_v42 }
 0x4e7   : > { %2711 = vrcp.f32 %v953_v43 }
 0x4ec   : > { %v2710_v44 = vpop.eup %2709 }
 0x4ed   : > { %v1260_v45 = vsel %vm802_vm9, %v2710_v44, 0.0  ;;  %v2712_v46 = vpop.eup %2711 }
 0x4ee   : > { %1261 = vadd.xlane.f32.xlu1 %v1260_v45  ;;  %1020 = vrot.lane.b32.xlu2 %v3145_v59, %s2927_s5  ;;  %v955_v47 = vmul.f32 %v2712_v46, %v2700_v13  ;;  %v1075_v59 = vsub.f32 %v3210_v57, %v1074_v25 }
 0x4f0   : > { %v956_v52 = vpack.c.bf16 %v955_v47, %v955_v47  ;;  %v1076_v56 = vmul.f32 1.442695, %v1075_v59 }
 0x4f2   : > { %2713 = vpow2.f32 %v1076_v56 }
 0x4f3   : > { %v958_v48 = vpop.permute.xlu1 %957 }
 0x4f4   : > { %v895_v49 = vpop.permute.xlu0 %894  ;;  %v963_v50 = vsel %vm839_vm10, %v958_v48, 0 }
 0x4f5   : > { %v900_v51 = vsel %vm839_vm10, %v895_v49, 0  ;;  %972 = vmatpush.bf16.msrb.mxu1 %v963_v50 }
 0x4f6   : > { %909 = vmatpush.bf16.msra.mxu2 %v900_v51 }
 0x4f8   : > { %2453 = vmatmul.msk.bf16.vlgmr.msrb.gmra.mxu1 %vm802_vm9, %v956_v52  ;;  %v2714_v58 = vpop.eup %2713 }
 0x4f9   : > { %v1078_v60 = vsel %vm802_vm9, %v2714_v58, 0.0 }
 0x4fa   : > { %1266 = vrot.lane.b32.xlu0 %v3159_v0, %s2927_s5 }
 0x4fb   : > { %v1143_v53 = vpop.permute.xlu1 %1142 }
 0x4fc   : > { %v1148_v57 = vsel %vm839_vm10, %v1143_v53, 0 }
 0x503   : > { %v1085_v54 = vpop.permute.xlu1 %1084 }
 0x504   : > { %v1090_v55 = vsel %vm839_vm10, %v1085_v54, 0  ;;  %v2590_v54 = vld [vmem:[%s3074_s28 + $0x8] sm:$0xff] }
 0x505   : > { %1099 = vmatpush.bf16.msra.mxu1 %v1090_v55  ;;  %1325 = vmatpush.bf16.msra.mxu0 %v2590_v54  ;;  %v2589_v55 = vld [vmem:[%s3074_s28] sm:$0xff] }
 0x509   : > { %1326 = vmatpush.bf16.msra.mxu0 %v2589_v55 }
 0x517   : > { %1079 = vadd.xlane.f32.xlu2 %v1078_v60 }
 0x52f   : > { %1204 = vrot.lane.b32.xlu2 %v3159_v0, %s2925_s18  ;;  %s2930_s18 = smov 24  }
 0x541   : > { %v1016_v61 = vpop.xlane.xlu2 %1015 }
 0x549   : > { %v890_v62 = vpop.xlane.xlu2 %889 }
 0x54a   : > { %2715 = vrcp.f32 %v890_v62 }
 0x54b   : > { %2717 = vrcp.f32 %v1016_v61  ;;  %v2679_v61 = vld [vmem:[%s3108_s20 + $0x2] ss:$0 sm:$0xff] }
 0x550   : > { %v2716_v63 = vpop.eup %2715 }
 0x551   : > { %v892_v1 = vmul.f32 %v2716_v63, %v2704_v30  ;;  %v1021_v3 = vpop.permute.xlu2 %1020  ;;  %v1138_v7 = vpop.xlane.xlu0 %1137 }
 0x552   : > { %v1026_v5 = vsel %vm839_vm10, %v1021_v3, 0  ;;  %v2718_v8 = vpop.eup %2717  ;;  %2719 = vrcp.f32 %v1138_v7 }
 0x553   : > { %v893_v6 = vpack.c.bf16 %v892_v1, %v892_v1  ;;  %1035 = vmatpush.bf16.msrb.mxu2 %v1026_v5  ;;  %v1018_v0 = vmul.f32 %v2718_v8, %v3227_v26 }
 0x555   : > { %2451 = vmatmul.msk.bf16.vlgmr.msra.gmra.mxu2 %vm802_vm9, %v893_v6  ;;  %v1019_v10 = vpack.c.bf16 %v1018_v0, %v1018_v0  ;;  %v2596_v0 = vld [vmem:[%s3084_s16 + $0x8] sm:$0xff] }
 0x556   : > { %1479 = vmatpush.bf16.msrb.mxu3 %v2596_v0 }
 0x557   : > { %1157 = vmatpush.bf16.msra.mxu2 %v1148_v57 }
 0x558   : > { %v2720_v14 = vpop.eup %2719 }
 0x559   : > { %v1200_v11 = vpop.xlane.xlu0 %1199  ;;  %v1140_v16 = vmul.f32 %v2720_v14, %v3232_v36 }
 0x55b   : > { %v1141_v17 = vpack.c.bf16 %v1140_v16, %v1140_v16 }
 0x561   : > { %v1262_v18 = vpop.xlane.xlu1 %1261 }
 0x562   : > { %2721 = vrcp.f32 %v1262_v18 }
 0x565   : > { %2455 = vmatmul.msk.bf16.vlgmr.msrb.gmra.mxu2 %vm802_vm9, %v1019_v10  ;;  %v2595_v10 = vld [vmem:[%s3084_s16] sm:$0xff] }
 0x566   : > { %1480 = vmatpush.bf16.msrb.mxu3 %v2595_v10 }
 0x568   : > { %v2722_v20 = vpop.eup %2721 }
 0x569   : > { %v1264_v22 = vmul.f32 %v2722_v20, %v2710_v44 }
 0x56b   : > { %v1265_v9 = vpack.c.bf16 %v1264_v22, %v1264_v22  ;;  %v2594_v22 = vld [vmem:[#allocation6 + $0x8] sm:$0xff] }
 0x56c   : > { %v1267_v13 = vpop.permute.xlu0 %1266 }
 0x56d   : > { %v1272_v15 = vsel %vm839_vm10, %v1267_v13, 0 }
 0x56e   : > { %1281 = vmatpush.bf16.msrb.mxu2 %v1272_v15 }
 0x575   : > { %v974_v19 = vpop.f32.mrf.mxu1  ;;  %2459 = vmatmul.msk.bf16.vlgmr.msra.gmra.mxu2 %vm802_vm9, %v1141_v17 }
 0x576   : > { %v978_v35 = vpack.c.bf16 %v974_v19, %v974_v19 }
 0x57d   : > { %v976_v21 = vpop.f32.mrf.mxu1 }
 0x585   : > { %2463 = vmatmul.msk.bf16.vlgmr.msrb.gmra.mxu2 %vm802_vm9, %v1265_v9  ;;  %v2592_v9 = vld [vmem:[%s3079_s19 + $0x8] sm:$0xff] }
 0x58a   : > { %v1080_v23 = vpop.xlane.xlu2 %1079 }
 0x58b   : > { %2723 = vrcp.f32 %v1080_v23 }
 0x58c   : > { %2725 = vrcp.f32 %v1200_v11  ;;  %v2593_v11 = vld [vmem:[#allocation6] sm:$0xff] }
 0x58d   : > { %2502 = vmatmul.msk.bf16.vlgmr.msrb.gmra.mxu3 %vm699_vm1, %v2593_v11 }
 0x591   : > { %v2724_v24 = vpop.eup %2723 }
 0x592   : > { %v1082_v25 = vmul.f32 %v2724_v24, %v2714_v58  ;;  %v1205_v26 = vpop.permute.xlu2 %1204  ;;  %v2726_v29 = vpop.eup %2725 }
 0x593   : > { %v1210_v27 = vsel %vm839_vm10, %v1205_v26, 0  ;;  %v1202_v30 = vmul.f32 %v2726_v29, %v3236_v39  ;;  %v2591_v26 = vld [vmem:[%s3079_s19] sm:$0xff] }
 0x594   : > { %v1083_v28 = vpack.c.bf16 %v1082_v25, %v1082_v25  ;;  %1219 = vmatpush.bf16.msrb.mxu1 %v1210_v27  ;;  %v2682_v27 = vld [vmem:[%s3505_s3] ss:$0 sm:$0xff] }
 0x595   : > { %v1203_v31 = vpack.c.bf16 %v1202_v30, %v1202_v30 }
 0x596   : > { %2457 = vmatmul.msk.bf16.vlgmr.msra.gmra.mxu1 %vm802_vm9, %v1083_v28 }
 0x598   : > { %1423 = vmatpush.bf16.msra.mxu1 %v2592_v9 }
 0x59c   : > { %1424 = vmatpush.bf16.msra.mxu1 %v2591_v26 }
 0x59d   : > { %2503 = vmatmul.msk.bf16.gmra.mxu3 %vm699_vm1, %v2594_v22 }
 0x5a6   : > { %2461 = vmatmul.msk.bf16.vlgmr.msrb.gmra.mxu1 %vm802_vm9, %v1203_v31 }
 0x5d8   : > { %v911_v32 = vpop.f32.mrf.mxu2 }
 0x5d9   : > { %v915_v33 = vpack.c.bf16 %v911_v32, %v911_v32 }
 0x5db   : > { %917 = vrot.lane.b32.xlu0 %v915_v33, %s2928_s6 }
 0x5e0   : > { %v913_v34 = vpop.f32.mrf.mxu2 }
 0x5e3   : > { %980 = vrot.lane.b32.xlu0 %v978_v35, %s2929_s1 }
 0x5e8   : > { %v1037_v36 = vpop.f32.mrf.mxu2 }
 0x5e9   : > { %v1041_v37 = vpack.c.bf16 %v1037_v36, %v1037_v36 }
 0x5eb   : > { %1043 = vrot.lane.b32.xlu0 %v1041_v37, %s2930_s18 }
 0x5f0   : > { %v1039_v38 = vpop.f32.mrf.mxu2 }
 0x5f8   : > { %v1159_v39 = vpop.f32.mrf.mxu2 }
 0x5f9   : > { %v1163_v40 = vpack.c.bf16 %v1159_v39, %v1159_v39 }
 0x5fb   : > { %1165 = vrot.lane.b32.xlu1 %v1163_v40, %s2928_s6 }
 0x600   : > { %v1161_v41 = vpop.f32.mrf.mxu2 }
 0x608   : > { %v1283_v42 = vpop.f32.mrf.mxu2 }
 0x609   : > { %v1287_v50 = vpack.c.bf16 %v1283_v42, %v1283_v42 }
 0x610   : > { %v1285_v43 = vpop.f32.mrf.mxu2  ;;  %v1482_v28 = vpop.f32.mrf.mxu3 }
 0x611   : > { %v1483_v31 = vadd.f32 %v2682_v27, %v1482_v28 }
 0x613   : > { %v1101_v44 = vpop.f32.mrf.mxu1  ;;  %v1492_v36 = vpack.c.bf16 %v1483_v31, %v1483_v31 }
 0x614   : > { %v1105_v45 = vpack.c.bf16 %v1101_v44, %v1101_v44 }
 0x615   : > { %v1498_v41 = vunpack.c.l.b16 %v1492_v36 }
 0x616   : > { %1106 = vst.msk [vmem:[#allocation2 + $0x4] sm:$0xf] %vm857_vm11, %v1105_v45 }
 0x618   : > { %v1484_v37 = vpop.f32.mrf.mxu3 }
 0x619   : > { %v1485_v39 = vadd.f32 %v2682_v27, %v1484_v37 }
 0x61b   : > { %v1103_v46 = vpop.f32.mrf.mxu1  ;;  %v1493_v42 = vpack.c.bf16 %v1485_v39, %v1485_v39 }
 0x61d   : > { %v1499_v46 = vunpack.c.l.b16 %v1493_v42 }
 0x623   : > { %v1221_v47 = vpop.f32.mrf.mxu1 }
 0x624   : > { %v1225_v48 = vpack.c.bf16 %v1221_v47, %v1221_v47 }
 0x626   : > { %1227 = vrot.lane.b32.xlu2 %v1225_v48, %s2929_s1  ;;  %v3312_v48 = vpack.c.b16 %v1499_v46, %v1498_v41 }
 0x62b   : > { %v1223_v49 = vpop.f32.mrf.mxu1 }
 0x62e   : > { %1289 = vrot.lane.b32.xlu2 %v1287_v50, %s2930_s18 }
 0x64d   : > { %v918_v51 = vpop.permute.xlu0 %917 }
 0x64e   : > { %921 = vst.msk [vmem:[#allocation2] sm:$0xf] %vm920_vm12, %v918_v51 }
 0x655   : > { %v981_v52 = vpop.permute.xlu0 %980 }
 0x656   : > { %984 = vst.msk [vmem:[#allocation2] sm:$0xf] %vm983_vm13, %v981_v52  ;;  %v2680_v52 = vld [vmem:[%s3108_s20 + $0x3] ss:$0 sm:$0xff] }
 0x65d   : > { %v1044_v53 = vpop.permute.xlu0 %1043 }
 0x65e   : > { %1047 = vst.msk [vmem:[#allocation2] sm:$0xf] %vm1046_vm14, %v1044_v53 }
 0x66d   : > { %v1166_v59 = vpop.permute.xlu1 %1165 }
 0x66e   : > { %1168 = vst.msk [vmem:[#allocation2 + $0x4] sm:$0xf] %vm920_vm12, %v1166_v59  ;;  %v2681_v59 = vld [vmem:[%s3108_s20 + $0x4] ss:$0 sm:$0xff] }
 0x680   : > { %v1228_v56 = vpop.permute.xlu2 %1227 }
 0x681   : > { %1230 = vst.msk [vmem:[#allocation2 + $0x4] sm:$0xf] %vm983_vm13, %v1228_v56 }
 0x688   : > { %v1290_v58 = vpop.permute.xlu2 %1289 }
 0x689   : > { %1292 = vst.msk [vmem:[#allocation2 + $0x4] sm:$0xf] %vm1046_vm14, %v1290_v58 }
 0x690   : > { %v2588_v60 = vld [vmem:[#allocation2] sm:$0xff] }
 0x691   : > { %2476 = vmatmul.msk.bf16.vlgmr.msra.gmra.mxu0 %vm699_vm1, %v2588_v60 }
 0x70e   : > { %v1328_v62 = vpop.f32.mrf.mxu0 }
 0x70f   : > { %v1333_v63 = vadd.f32 %v1328_v62, %v3117_v2 }
 0x711   : > { %v1337_v1 = vadd.f32 %v2679_v61, %v1333_v63 }
 0x713   : > { %1339 = vst.msk [vmem:[#allocation9] sm:$0xff] %vm699_vm1, %v1337_v1  ;;  %v1505_v1 = vsel %vm802_vm9, %v3312_v48, 0 }
 0x714   : > { %1514 = vmatpush.bf16.xpose.msra.mxu2 %v1505_v1 }
 0x716   : > { %v1330_v3 = vpop.f32.mrf.mxu0 }
 0x717   : > { %v1334_v5 = vadd.f32 %v1330_v3, %v3121_v4  ;;  %v1487_v3 = vpop.f32.mrf.mxu3 }
 0x719   : > { %v1338_v6 = vadd.f32 %v2679_v61, %v1334_v5  ;;  %v1488_v5 = vadd.f32 %v2682_v27, %v1487_v3 }
 0x71a   : > { %v3284_v57 = vld [vmem:[#allocation9] sm:$0xff] }
 0x71b   : > { %1340 = vst.msk [vmem:[#allocation9 + $0x8] sm:$0xff] %vm699_vm1, %v1338_v6  ;;  %v1345_v7 = vsel %vm699_vm1, %v3284_v57, 0.0  ;;  %v1494_v6 = vpack.c.bf16 %v1488_v5, %v1488_v5 }
 0x71c   : > { %1346 = vadd.xlane.f32.xlu0 %v1345_v7 }
 0x71d   : > { %v1739_v0 = vunpack.c.l.b16 %v1494_v6 }
 0x71f   : > { %v1489_v7 = vpop.f32.mrf.mxu3 }
 0x722   : > { %v3289_v8 = vld [vmem:[#allocation9 + $0x8] sm:$0xff] }
 0x723   : > { %v1348_v2 = vsel %vm699_vm1, %v3289_v8, 0.0 }
 0x724   : > { %1349 = vadd.xlane.f32.xlu2 %v1348_v2  ;;  %v1490_v2 = vadd.f32 %v2682_v27, %v1489_v7 }
 0x726   : > { %v1495_v10 = vpack.c.bf16 %v1490_v2, %v1490_v2 }
 0x728   : > { %v1740_v11 = vunpack.c.l.b16 %v1495_v10 }
 0x78f   : > { %v1347_v4 = vpop.xlane.xlu0 %1346 }
 0x790   : > { %v1351_v13 = vmul.f32 %v1347_v4, %v3125_v12  ;;  %v3327_v4 = vpack.c.b16 %v1740_v11, %v1739_v0 }
 0x792   : > { %v1353_v14 = vsub.f32 %v3284_v57, %v1351_v13 }
 0x794   : > { %v1355_v15 = vmul.f32 %v1353_v14, %v1353_v14 }
 0x796   : > { %v1357_v16 = vsel %vm699_vm1, %v1355_v15, 0.0 }
 0x797   : > { %1358 = vadd.xlane.f32.xlu1 %v1357_v16  ;;  %v1350_v17 = vpop.xlane.xlu2 %1349 }
 0x798   : > { %v1352_v18 = vmul.f32 %v1350_v17, %v3125_v12 }
 0x79a   : > { %v1354_v19 = vsub.f32 %v3289_v8, %v1352_v18 }
 0x79c   : > { %v1356_v20 = vmul.f32 %v1354_v19, %v1354_v19 }
 0x79e   : > { %v1360_v21 = vsel %vm699_vm1, %v1356_v20, 0.0  ;;  %v2683_v20 = vld [vmem:[%s3108_s20 + $0x5] ss:$0 sm:$0xff] }
 0x79f   : > { %1361 = vadd.xlane.f32.xlu0 %v1360_v21 }
 0x7b0   : > { %1559 = vrot.lane.b32.xlu1 %v3312_v48, %s2920_s23 }
 0x7b3   : > { %1533 = vrot.lane.b32.xlu0 %v3312_v48, %s2919_s25 }
 0x7b8   : > { %1679 = vrot.lane.b32.xlu1 %v3312_v48, %s2921_s24 }
 0x7bb   : > { %1619 = vrot.lane.b32.xlu0 %v3312_v48, %s2922_s27 }
 0x7c0   : > { %1799 = vrot.lane.b32.xlu1 %v3327_v4, %s2920_s23 }
 0x7c8   : > { %1919 = vrot.lane.b32.xlu1 %v3327_v4, %s2921_s24 }
 0x80a   : > { %v1359_v23 = vpop.xlane.xlu1 %1358 }
 0x80b   : > { %v1363_v24 = vmul.f32 %v1359_v23, %v3125_v12 }
 0x80d   : > { %v1365_v25 = vadd.f32 1e-05, %v1363_v24 }
 0x80f   : > { %2727 = vrsqrt.f32 %v1365_v25  ;;  %vm1373_vm0 = vweird.f32 %v1365_v25 }
 0x812   : > { %v1362_v29 = vpop.xlane.xlu0 %1361 }
 0x813   : > { %v1364_v30 = vmul.f32 %v1362_v29, %v3125_v12 }
 0x815   : > { %v2728_v32 = vpop.eup %2727  ;;  %v1366_v33 = vadd.f32 1e-05, %v1364_v30 }
 0x816   : > { %v1368_v34 = vmul.f32 %v2728_v32, %v1365_v25  ;;  %vm1374_vm15 = vweird.f32 %v2728_v32 }
 0x817   : > { %2729 = vrsqrt.f32 %v1366_v33  ;;  %vm1375_vm2 = vmor %vm1373_vm0, %vm1374_vm15  ;;  %vm1383_vm4 = vweird.f32 %v1366_v33 }
 0x818   : > { %v1369_v35 = vmul.f32 %v2728_v32, %v1368_v34 }
 0x81a   : > { %v1370_v38 = vmul.f32 0.5, %v1369_v35 }
 0x81c   : > { %v1371_v40 = vsub.f32 1.5, %v1370_v38 }
 0x81d   : > { %v2730_v43 = vpop.eup %2729 }
 0x81e   : > { %v1372_v44 = vmul.f32 %v2728_v32, %v1371_v40  ;;  %v1378_v45 = vmul.f32 %v2730_v43, %v1366_v33  ;;  %vm1384_vm3 = vweird.f32 %v2730_v43 }
 0x81f   : > { %vm1385_vm5 = vmor %vm1383_vm4, %vm1384_vm3 }
 0x820   : > { %v1379_v47 = vmul.f32 %v2730_v43, %v1378_v45  ;;  %v1376_v49 = vsel %vm1375_vm2, %v2728_v32, %v1372_v44 }
 0x821   : > { %v1387_v53 = vmul.f32 %v1376_v49, %v1353_v14 }
 0x822   : > { %v1380_v50 = vmul.f32 0.5, %v1379_v47  ;;  %v1560_v13 = vpop.permute.xlu1 %1559 }
 0x823   : > { %v1390_v56 = vmul.f32 %v2680_v52, %v1387_v53  ;;  %v1565_v15 = vsel %vm802_vm9, %v1560_v13, 0 }
 0x824   : > { %v1381_v51 = vsub.f32 1.5, %v1380_v50  ;;  %1574 = vmatpush.bf16.xpose.msrb.mxu1 %v1565_v15 }
 0x825   : > { %v1393_v61 = vadd.f32 %v2681_v59, %v1390_v56  ;;  %v1534_v14 = vpop.permute.xlu0 %1533 }
 0x826   : > { %v1382_v54 = vmul.f32 %v2730_v43, %v1381_v51  ;;  %1546 = vmatpush.bf16.msrb.mxu0 %v1534_v14  ;;  %v1746_v51 = vsel %vm802_vm9, %v3327_v4, 0 }
 0x828   : > { %v1386_v55 = vsel %vm1385_vm5, %v2730_v43, %v1382_v54 }
 0x829   : > { %v1388_v58 = vmul.f32 %v1386_v55, %v1354_v19 }
 0x82a   : > { %v1680_v16 = vpop.permute.xlu1 %1679 }
 0x82b   : > { %v1391_v60 = vmul.f32 %v2680_v52, %v1388_v58  ;;  %v1685_v18 = vsel %vm802_vm9, %v1680_v16, 0 }
 0x82c   : > { %1694 = vmatpush.bf16.xpose.msra.mxu3 %v1685_v18 }
 0x82d   : > { %v1394_v62 = vadd.f32 %v2681_v59, %v1391_v60  ;;  %v1620_v17 = vpop.permute.xlu0 %1619 }
 0x82e   : > { %v1625_v19 = vsel %vm802_vm9, %v1620_v17, 0 }
 0x82f   : > { %v1395_v63 = vpack.c.bf16 %v1394_v62, %v1393_v61  ;;  %1634 = vmatpush.bf16.xpose.msra.mxu0 %v1625_v19 }
 0x831   : > { %2485 = vmatmul.msk.bf16.vlgmr.msra.gmra.mxu1 %vm699_vm1, %v1395_v63 }
 0x832   : > { %v1800_v28 = vpop.permute.xlu1 %1799 }
 0x833   : > { %v1805_v29 = vsel %vm802_vm9, %v1800_v28, 0 }
 0x834   : > { %1814 = vmatpush.bf16.xpose.msrb.mxu3 %v1805_v29 }
 0x83a   : > { %v1920_v41 = vpop.permute.xlu1 %1919 }
 0x83b   : > { %v1925_v42 = vsel %vm802_vm9, %v1920_v41, 0 }
 0x8ae   : > { %v1426_v21 = vpop.f32.mrf.mxu1 }
 0x8af   : > { %v1427_v22 = vadd.f32 %v2683_v20, %v1426_v21 }
 0x8b1   : > { %v1431_v9 = vpack.c.bf16 %v1427_v22, %v1427_v22 }
 0x8b3   : > { %2504 = vmatmul.msk.bf16.vlgmr.msra.gmra.mxu2 %vm802_vm9, %v1431_v9  ;;  %v1555_v33 = vunpack.c.l.b16 %v1431_v9 }
 0x8b5   : > { %v1556_v34 = vpack.c.b16 %v1555_v33, %v1555_v33 }
 0x8b6   : > { %v1428_v23 = vpop.f32.mrf.mxu1 }
 0x8b7   : > { %v1429_v24 = vadd.f32 %v2683_v20, %v1428_v23 }
 0x8b9   : > { %v1432_v25 = vpack.c.bf16 %v1429_v24, %v1429_v24 }
 0x8bb   : > { %v1795_v26 = vunpack.c.l.b16 %v1432_v25 }
 0x8bd   : > { %v1796_v27 = vpack.c.b16 %v1795_v26, %v1795_v26 }
 0x8bf   : > { %1857 = vrot.lane.b32.xlu1 %v1796_v27, %s2922_s27 }
 0x931   : > { %v1858_v62 = vpop.permute.xlu1 %1857 }
 0x936   : > { %v1516_v30 = vpop.f32.mrf.mxu2 }
 0x937   : > { %v1521_v31 = vsel %vm1520_vm6, %v1516_v30, -inf }
 0x938   : > { %1522 = vmax.xlane.f32.xlu2 %v1521_v31 }
 0x93e   : > { %v1518_v32 = vpop.f32.mrf.mxu2 }
 0x950   : > { %1557 = vrot.lane.b32.xlu2 %v1556_v34, %s2920_s23 }
 0x958   : > { %1677 = vrot.lane.b32.xlu2 %v1556_v34, %s2921_s24 }
 0x960   : > { %1617 = vrot.lane.b32.xlu2 %v1556_v34, %s2922_s27 }
 0x968   : > { %1917 = vrot.lane.b32.xlu2 %v1796_v27, %s2921_s24 }
 0x9ab   : > { %v1523_v35 = vpop.xlane.xlu2 %1522 }
 0x9ac   : > { %v1524_v36 = vsub.f32 %v1516_v30, %v1523_v35 }
 0x9ae   : > { %v1525_v37 = vmul.f32 1.442695, %v1524_v36 }
 0x9b0   : > { %2731 = vpow2.f32 %v1525_v37 }
 0x9b3   : > { %v1558_v38 = vpop.permute.xlu2 %1557 }
 0x9b4   : > { %2506 = vmatmul.msk.bf16.vlgmr.msrb.gmra.mxu1 %vm802_vm9, %v1558_v38 }
 0x9b6   : > { %v2732_v39 = vpop.eup %2731 }
 0x9b7   : > { %v1527_v40 = vsel %vm1520_vm6, %v2732_v39, 0.0 }
 0x9b8   : > { %1528 = vadd.xlane.f32.xlu0 %v1527_v40 }
 0x9bb   : > { %v1678_v43 = vpop.permute.xlu2 %1677 }
 0x9bc   : > { %2510 = vmatmul.msk.bf16.vlgmr.msra.gmra.mxu3 %vm802_vm9, %v1678_v43 }
 0x9bd   : > { %1934 = vmatpush.bf16.xpose.msra.mxu3 %v1925_v42 }
 0x9c3   : > { %v1618_v59 = vpop.permute.xlu2 %1617 }
 0x9cb   : > { %v1918_v61 = vpop.permute.xlu2 %1917 }
 0x9cc   : > { %1797 = vrot.lane.b32.xlu0 %v1796_v27, %s2920_s23 }
 0x9d4   : > { %1859 = vrot.lane.b32.xlu0 %v3327_v4, %s2922_s27 }
 0xa2b   : > { %v1529_v44 = vpop.xlane.xlu0 %1528 }
 0xa2c   : > { %2733 = vrcp.f32 %v1529_v44 }
 0xa31   : > { %v1576_v45 = vpop.f32.mrf.mxu1 }
 0xa32   : > { %v2734_v46 = vpop.eup %2733  ;;  %v1580_v47 = vsel %vm1520_vm6, %v1576_v45, -inf }
 0xa33   : > { %v1531_v49 = vmul.f32 %v2734_v46, %v2732_v39  ;;  %1581 = vmax.xlane.f32.xlu2 %v1580_v47 }
 0xa35   : > { %v1532_v50 = vpack.c.bf16 %v1531_v49, %v1531_v49 }
 0xa37   : > { %2505 = vmatmul.msk.bf16.vlgmr.msrb.gmra.mxu0 %vm1520_vm6, %v1532_v50 }
 0xa38   : > { %1755 = vmatpush.bf16.xpose.msrb.mxu0 %v1746_v51 }
 0xa39   : > { %v1578_v52 = vpop.f32.mrf.mxu1 }
 0xa3e   : > { %v1798_v53 = vpop.permute.xlu0 %1797 }
 0xa3f   : > { %v1696_v54 = vpop.f32.mrf.mxu3  ;;  %2514 = vmatmul.msk.bf16.vlgmr.msrb.gmra.mxu3 %vm802_vm9, %v1798_v53 }
 0xa40   : > { %v1700_v55 = vsel %vm1520_vm6, %v1696_v54, -inf }
 0xa41   : > { %1701 = vmax.xlane.f32.xlu0 %v1700_v55 }
 0xa46   : > { %v1860_v56 = vpop.permute.xlu0 %1859 }
 0xa47   : > { %2508 = vmatmul.msk.bf16.vlgmr.msra.gmra.mxu0 %vm802_vm9, %v1618_v59  ;;  %v1698_v58 = vpop.f32.mrf.mxu3  ;;  %v1865_v60 = vsel %vm802_vm9, %v1860_v56, 0 }
 0xa48   : > { %1874 = vmatpush.bf16.xpose.msra.mxu0 %v1865_v60 }
 0xa4f   : > { %2518 = vmatmul.msk.bf16.vlgmr.msra.gmra.mxu3 %vm802_vm9, %v1918_v61 }
 0xa57   : > { %2512 = vmatmul.msk.bf16.vlgmr.msrb.gmra.mxu0 %vm802_vm9, %v1432_v25 }
 0xa67   : > { %2516 = vmatmul.msk.bf16.vlgmr.msra.gmra.mxu0 %vm802_vm9, %v1858_v62 }
 0xaa6   : > { %v1582_v3 = vpop.xlane.xlu2 %1581 }
 0xaa7   : > { %v1583_v5 = vsub.f32 %v1576_v45, %v1582_v3 }
 0xaa9   : > { %v1584_v7 = vmul.f32 1.442695, %v1583_v5 }
 0xaab   : > { %2735 = vpow2.f32 %v1584_v7 }
 0xab1   : > { %v3365_v15 = vpop.eup %2735 }
 0xab2   : > { %v1586_v17 = vsel %vm1520_vm6, %v3365_v15, 0.0 }
 0xab4   : > { %v1548_v63 = vpop.f32.mrf.mxu0  ;;  %v1702_v2 = vpop.xlane.xlu0 %1701 }
 0xab5   : > { %v1552_v1 = vpack.c.bf16 %v1548_v63, %v1548_v63  ;;  %v1703_v0 = vsub.f32 %v1696_v54, %v1702_v2 }
 0xab7   : > { %1553 = vst.msk [vmem:[#allocation2] sm:$0xf] %vm857_vm11, %v1552_v1  ;;  %v1704_v14 = vmul.f32 1.442695, %v1703_v0 }
 0xab9   : > { %2737 = vpow2.f32 %v1704_v14 }
 0xabc   : > { %v1550_v6 = vpop.f32.mrf.mxu0 }
 0xabf   : > { %v3369_v19 = vpop.eup %2737 }
 0xac0   : > { %v1706_v22 = vsel %vm1520_vm6, %v3369_v19, 0.0 }
 0xac2   : > { %v1816_v10 = vpop.f32.mrf.mxu3 }
 0xac3   : > { %v1820_v11 = vsel %vm1520_vm6, %v1816_v10, -inf }
 0xac4   : > { %1821 = vmax.xlane.f32.xlu2 %v1820_v11  ;;  %v1636_v13 = vpop.f32.mrf.mxu0 }
 0xac5   : > { %v1640_v25 = vsel %vm1520_vm6, %v1636_v13, -inf }
 0xaca   : > { %v1818_v16 = vpop.f32.mrf.mxu3 }
 0xacc   : > { %v1638_v18 = vpop.f32.mrf.mxu0  ;;  %1587 = vadd.xlane.f32.xlu2 %v1586_v17 }
 0xad2   : > { %v1936_v20 = vpop.f32.mrf.mxu3 }
 0xad3   : > { %v1940_v21 = vsel %vm1520_vm6, %v1936_v20, -inf }
 0xad4   : > { %v1757_v9 = vpop.f32.mrf.mxu0  ;;  %1941 = vmax.xlane.f32.xlu1 %v1940_v21  ;;  %1707 = vadd.xlane.f32.xlu2 %v1706_v22 }
 0xad5   : > { %v1761_v23 = vsel %vm1520_vm6, %v1757_v9, -inf }
 0xad6   : > { %1762 = vmax.xlane.f32.xlu0 %v1761_v23 }
 0xada   : > { %v1938_v24 = vpop.f32.mrf.mxu3 }
 0xadc   : > { %v1759_v26 = vpop.f32.mrf.mxu0  ;;  %1641 = vmax.xlane.f32.xlu1 %v1640_v25 }
 0xae4   : > { %v1876_v27 = vpop.f32.mrf.mxu0 }
 0xae5   : > { %v1880_v29 = vsel %vm1520_vm6, %v1876_v27, -inf }
 0xaea   : > { %1652 = vrot.lane.b32.xlu0 %v3312_v48, %s2923_s15 }
 0xaec   : > { %v1878_v28 = vpop.f32.mrf.mxu0  ;;  %1712 = vrot.lane.b32.xlu2 %v3312_v48, %s2924_s22 }
 0xaf4   : > { %1832 = vrot.lane.b32.xlu2 %v3327_v4, %s2917_s7 }
 0xaf5   : > { %1592 = vrot.lane.b32.xlu1 %v3312_v48, %s2917_s7  ;;  %s2227_s7 = sshll.u32 %s3487_s14, 4  ;;  %s2228_s7 = int_to_ptr.hbm [resolvable:$true] %s2227_s7 }
 0xafc   : > { %1773 = vrot.lane.b32.xlu2 %v3327_v4, %s2919_s25 }
 0xb14   : > { %1881 = vmax.xlane.f32.xlu0 %v1880_v29 }
 0xb37   : > { %v1822_v30 = vpop.xlane.xlu2 %1821 }
 0xb38   : > { %v1823_v31 = vsub.f32 %v1816_v10, %v1822_v30 }
 0xb3a   : > { %v1824_v32 = vmul.f32 1.442695, %v1823_v31 }
 0xb3c   : > { %2739 = vpow2.f32 %v1824_v32 }
 0xb3f   : > { %v1588_v33 = vpop.xlane.xlu2 %1587 }
 0xb42   : > { %v2740_v34 = vpop.eup %2739 }
 0xb43   : > { %v1826_v35 = vsel %vm1520_vm6, %v2740_v34, 0.0 }
 0xb44   : > { %1827 = vadd.xlane.f32.xlu1 %v1826_v35 }
 0xb47   : > { %v1942_v36 = vpop.xlane.xlu1 %1941  ;;  %v1708_v37 = vpop.xlane.xlu2 %1707 }
 0xb48   : > { %v1943_v38 = vsub.f32 %v1936_v20, %v1942_v36 }
 0xb49   : > { %v1763_v48 = vpop.xlane.xlu0 %1762 }
 0xb4a   : > { %v1944_v39 = vmul.f32 1.442695, %v1943_v38  ;;  %v1764_v44 = vsub.f32 %v1757_v9, %v1763_v48 }
 0xb4c   : > { %2741 = vpow2.f32 %v1944_v39  ;;  %v1765_v47 = vmul.f32 1.442695, %v1764_v44 }
 0xb4f   : > { %v1642_v40 = vpop.xlane.xlu1 %1641  ;;  %v1713_v41 = vpop.permute.xlu2 %1712 }
 0xb50   : > { %v1643_v42 = vsub.f32 %v1636_v13, %v1642_v40 }
 0xb52   : > { %v2742_v43 = vpop.eup %2741  ;;  %v1644_v45 = vmul.f32 1.442695, %v1643_v42 }
 0xb53   : > { %v1946_v46 = vsel %vm1520_vm6, %v2742_v43, 0.0 }
 0xb54   : > { %2743 = vpow2.f32 %v1644_v45  ;;  %1947 = vadd.xlane.f32.xlu2 %v1946_v46 }
 0xb55   : > { %2745 = vpow2.f32 %v1765_v47 }
 0xb56   : > { %2747 = vrcp.f32 %v1588_v33 }
 0xb57   : > { %v1833_v49 = vpop.permute.xlu2 %1832  ;;  %2749 = vrcp.f32 %v1708_v37 }
 0xb5a   : > { %v2744_v50 = vpop.eup %2743 }
 0xb5b   : > { %v1646_v51 = vsel %vm1520_vm6, %v2744_v50, 0.0  ;;  %v2746_v54 = vpop.eup %2745 }
 0xb5c   : > { %v1653_v52 = vpop.permute.xlu0 %1652  ;;  %1647 = vadd.xlane.f32.xlu0 %v1646_v51  ;;  %v2748_v55 = vpop.eup %2747  ;;  %v1767_v59 = vsel %vm1520_vm6, %v2746_v54, 0.0 }
 0xb5d   : > { %1665 = vmatpush.bf16.msra.mxu1 %v1653_v52  ;;  %v1590_v56 = vmul.f32 %v2748_v55, %v3365_v15  ;;  %v2750_v61 = vpop.eup %2749  ;;  %v2598_v55 = vld [vmem:[%s3093_s26] sm:$0xff] }
 0xb5e   : > { %v1710_v62 = vmul.f32 %v2750_v61, %v3369_v19 }
 0xb5f   : > { %v1774_v53 = vpop.permute.xlu2 %1773  ;;  %v1591_v60 = vpack.c.bf16 %v1590_v56, %v1590_v56 }
 0xb60   : > { %v1711_v63 = vpack.c.bf16 %v1710_v62, %v1710_v62 }
 0xb61   : > { %1786 = vmatpush.bf16.msrb.mxu1 %v1774_v53 }
 0xb64   : > { %1768 = vadd.xlane.f32.xlu0 %v1767_v59 }
 0xb67   : > { %v1593_v58 = vpop.permute.xlu1 %1592 }
 0xb68   : > { %1605 = vmatpush.bf16.msrb.mxu2 %v1593_v58 }
 0xb6b   : > { %2507 = vmatmul.msk.bf16.vlgmr.msrb.gmra.mxu2 %vm1520_vm6, %v1591_v60  ;;  %v2684_v60 = vld [vmem:[%s3108_s20 + $0x6] ss:$0 sm:$0xff] }
 0xb6c   : > { %1725 = vmatpush.bf16.msra.mxu2 %v1713_v41 }
 0xb70   : > { %1845 = vmatpush.bf16.msrb.mxu2 %v1833_v49 }
 0xb78   : > { %1952 = vrot.lane.b32.xlu0 %v3327_v4, %s2924_s22 }
 0xb7b   : > { %2511 = vmatmul.msk.bf16.vlgmr.msra.gmra.mxu2 %vm1520_vm6, %v1711_v63 }
 0xb87   : > { %v1882_v1 = vpop.xlane.xlu0 %1881 }
 0xb88   : > { %v1883_v3 = vsub.f32 %v1876_v27, %v1882_v1 }
 0xb8a   : > { %v1884_v5 = vmul.f32 1.442695, %v1883_v3 }
 0xb8c   : > { %2751 = vpow2.f32 %v1884_v5 }
 0xb92   : > { %v2752_v6 = vpop.eup %2751 }
 0xb93   : > { %v1886_v7 = vsel %vm1520_vm6, %v2752_v6, 0.0 }
 0xb94   : > { %1887 = vadd.xlane.f32.xlu1 %v1886_v7 }
 0xbad   : > { %1892 = vrot.lane.b32.xlu1 %v3327_v4, %s2923_s15 }
 0xbb7   : > { %v1828_v2 = vpop.xlane.xlu1 %1827 }
 0xbb8   : > { %2753 = vrcp.f32 %v1828_v2 }
 0xbbe   : > { %v2754_v0 = vpop.eup %2753 }
 0xbbf   : > { %v1830_v10 = vmul.f32 %v2754_v0, %v2740_v34 }
 0xbc1   : > { %v1831_v11 = vpack.c.bf16 %v1830_v10, %v1830_v10 }
 0xbc3   : > { %2515 = vmatmul.msk.bf16.vlgmr.msrb.gmra.mxu2 %vm1520_vm6, %v1831_v11 }
 0xbc7   : > { %v1948_v18 = vpop.xlane.xlu2 %1947 }
 0xbcf   : > { %v1648_v13 = vpop.xlane.xlu0 %1647 }
 0xbd0   : > { %2755 = vrcp.f32 %v1648_v13 }
 0xbd6   : > { %v2756_v14 = vpop.eup %2755 }
 0xbd7   : > { %v1650_v15 = vmul.f32 %v2756_v14, %v2744_v50  ;;  %v1769_v17 = vpop.xlane.xlu0 %1768 }
 0xbd8   : > { %2757 = vrcp.f32 %v1769_v17 }
 0xbd9   : > { %v1651_v16 = vpack.c.bf16 %v1650_v15, %v1650_v15  ;;  %2759 = vrcp.f32 %v1948_v18 }
 0xbdb   : > { %2509 = vmatmul.msk.bf16.vlgmr.msra.gmra.mxu1 %vm1520_vm6, %v1651_v16 }
 0xbde   : > { %v2758_v19 = vpop.eup %2757 }
 0xbdf   : > { %v2760_v4 = vpop.eup %2759  ;;  %v1771_v20 = vmul.f32 %v2758_v19, %v2746_v54  ;;  %v2599_v54 = vld [vmem:[%s3093_s26 + $0x8] sm:$0xff] }
 0xbe0   : > { %v1950_v21 = vmul.f32 %v2760_v4, %v2742_v43  ;;  %2009 = vmatpush.bf16.msrb.mxu0 %v2599_v54  ;;  %v2601_v19 = vld [vmem:[%s3098_s30 + $0x8] sm:$0xff]  ;;  %v2602_v54 = vld [vmem:[%s3113_s2] sm:$0xff] }
 0xbe1   : > { %v1772_v22 = vpack.c.bf16 %v1771_v20, %v1771_v20 }
 0xbe2   : > { %v1951_v23 = vpack.c.bf16 %v1950_v21, %v1950_v21 }
 0xbe4   : > { %2010 = vmatpush.bf16.msrb.mxu0 %v2598_v55  ;;  %v2687_v55 = vld [vmem:[%s673_s21] ss:$0 sm:$0xff] }
 0xbea   : > { %v1953_v9 = vpop.permute.xlu0 %1952 }
 0xbeb   : > { %2513 = vmatmul.msk.bf16.vlgmr.msrb.gmra.mxu1 %vm1520_vm6, %v1772_v22  ;;  %1965 = vmatpush.bf16.msra.mxu2 %v1953_v9  ;;  %v2600_v22 = vld [vmem:[%s3098_s30] sm:$0xff]  ;;  %s2225_s30 = sshll.u32 %s2931_s0, 4  ;;  %s2226_s30 = int_to_ptr.vmem [resolvable:$true] %s2225_s30 }
 0xbee   : > { %v1607_v24 = vpop.f32.mrf.mxu2  ;;  %2519 = vmatmul.msk.bf16.vlgmr.msra.gmra.mxu2 %vm1520_vm6, %v1951_v23 }
 0xbef   : > { %v1611_v25 = vpack.c.bf16 %v1607_v24, %v1607_v24 }
 0xbf1   : > { %1613 = vrot.lane.b32.xlu2 %v1611_v25, %s2928_s6 }
 0xbf6   : > { %v1609_v26 = vpop.f32.mrf.mxu2 }
 0xbfe   : > { %v1727_v27 = vpop.f32.mrf.mxu2 }
 0xbff   : > { %v1731_v40 = vpack.c.bf16 %v1727_v27, %v1727_v27 }
 0xc06   : > { %v1729_v28 = vpop.f32.mrf.mxu2 }
 0xc07   : > { %v1888_v29 = vpop.xlane.xlu1 %1887 }
 0xc08   : > { %2761 = vrcp.f32 %v1888_v29 }
 0xc0e   : > { %v2762_v30 = vpop.eup %2761 }
 0xc0f   : > { %v1890_v31 = vmul.f32 %v2762_v30, %v2752_v6 }
 0xc11   : > { %v1891_v33 = vpack.c.bf16 %v1890_v31, %v1890_v31 }
 0xc1f   : > { %v1893_v32 = vpop.permute.xlu1 %1892 }
 0xc20   : > { %1905 = vmatpush.bf16.msra.mxu1 %v1893_v32 }
 0xc23   : > { %2517 = vmatmul.msk.bf16.vlgmr.msra.gmra.mxu1 %vm1520_vm6, %v1891_v33 }
 0xc24   : > { %2109 = vmatpush.bf16.msrb.mxu1 %v2601_v19 }
 0xc28   : > { %2110 = vmatpush.bf16.msrb.mxu1 %v2600_v22 }
 0xc46   : > { %v1847_v34 = vpop.f32.mrf.mxu2 }
 0xc47   : > { %v1851_v35 = vpack.c.bf16 %v1847_v34, %v1847_v34 }
 0xc49   : > { %1853 = vrot.lane.b32.xlu0 %v1851_v35, %s2928_s6 }
 0xc4b   : > { %v1614_v36 = vpop.permute.xlu2 %1613 }
 0xc4c   : > { %1616 = vst.msk [vmem:[#allocation2] sm:$0xf] %vm920_vm12, %v1614_v36 }
 0xc4e   : > { %v1849_v37 = vpop.f32.mrf.mxu2 }
 0xc58   : > { %v1667_v38 = vpop.f32.mrf.mxu1 }
 0xc59   : > { %v1671_v39 = vpack.c.bf16 %v1667_v38, %v1667_v38 }
 0xc5b   : > { %1673 = vrot.lane.b32.xlu1 %v1671_v39, %s2929_s1 }
 0xc60   : > { %v1669_v48 = vpop.f32.mrf.mxu1 }
 0xc61   : > { %v2686_v48 = vld [vmem:[%s3108_s20 + $0x8] ss:$0 sm:$0xff] }
 0xc63   : > { %1733 = vrot.lane.b32.xlu1 %v1731_v40, %s2930_s18 }
 0xc68   : > { %v1788_v41 = vpop.f32.mrf.mxu1 }
 0xc69   : > { %v1792_v42 = vpack.c.bf16 %v1788_v41, %v1788_v41 }
 0xc6b   : > { %1793 = vst.msk [vmem:[#allocation2 + $0x4] sm:$0xf] %vm857_vm11, %v1792_v42 }
 0xc70   : > { %v1790_v43 = vpop.f32.mrf.mxu1 }
 0xc71   : > { %v1967_v44 = vpop.f32.mrf.mxu2 }
 0xc72   : > { %v1971_v50 = vpack.c.bf16 %v1967_v44, %v1967_v44 }
 0xc79   : > { %v1969_v45 = vpop.f32.mrf.mxu2 }
 0xca0   : > { %v1907_v46 = vpop.f32.mrf.mxu1 }
 0xca1   : > { %v1911_v47 = vpack.c.bf16 %v1907_v46, %v1907_v46  ;;  %v2609_v46 = vld [vmem:[%s3113_s2 + $0x38] sm:$0xff] }
 0xca2   : > { %2202 = vmatpush.bf16.msrb.mxu3 %v2609_v46 }
 0xca3   : > { %1913 = vrot.lane.b32.xlu0 %v1911_v47, %s2929_s1  ;;  %v2608_v47 = vld [vmem:[%s3113_s2 + $0x30] sm:$0xff] }
 0xca6   : > { %2203 = vmatpush.bf16.msrb.mxu3 %v2608_v47 }
 0xca8   : > { %v1909_v49 = vpop.f32.mrf.mxu1 }
 0xca9   : > { %v2607_v49 = vld [vmem:[%s3113_s2 + $0x28] sm:$0xff] }
 0xcaa   : > { %2204 = vmatpush.bf16.msrb.mxu3 %v2607_v49 }
 0xcab   : > { %1973 = vrot.lane.b32.xlu0 %v1971_v50, %s2930_s18  ;;  %v2606_v50 = vld [vmem:[%s3113_s2 + $0x20] sm:$0xff] }
 0xcae   : > { %2205 = vmatpush.bf16.msrb.mxu3 %v2606_v50 }
 0xcbb   : > { %v1854_v51 = vpop.permute.xlu0 %1853 }
 0xcbc   : > { %1856 = vst.msk [vmem:[#allocation2 + $0x4] sm:$0xf] %vm920_vm12, %v1854_v51  ;;  %v2605_v51 = vld [vmem:[%s3113_s2 + $0x18] sm:$0xff] }
 0xcbd   : > { %2206 = vmatpush.bf16.msrb.mxu3 %v2605_v51 }
 0xccd   : > { %v1674_v52 = vpop.permute.xlu1 %1673 }
 0xcce   : > { %1676 = vst.msk [vmem:[#allocation2] sm:$0xf] %vm983_vm13, %v1674_v52  ;;  %v2604_v52 = vld [vmem:[%s3113_s2 + $0x10] sm:$0xff] }
 0xccf   : > { %2207 = vmatpush.bf16.msrb.mxu3 %v2604_v52 }
 0xcd5   : > { %v1734_v53 = vpop.permute.xlu1 %1733 }
 0xcd6   : > { %1736 = vst.msk [vmem:[#allocation2] sm:$0xf] %vm1046_vm14, %v1734_v53  ;;  %v2603_v53 = vld [vmem:[%s3113_s2 + $0x8] sm:$0xff] }
 0xcd7   : > { %2208 = vmatpush.bf16.msrb.mxu3 %v2603_v53 }
 0xcdb   : > { %2209 = vmatpush.bf16.msrb.mxu3 %v2602_v54 }
 0xd15   : > { %v1914_v59 = vpop.permute.xlu0 %1913 }
 0xd16   : > { %1916 = vst.msk [vmem:[#allocation2 + $0x4] sm:$0xf] %vm983_vm13, %v1914_v59 }
 0xd1d   : > { %v1974_v56 = vpop.permute.xlu0 %1973 }
 0xd1e   : > { %1976 = vst.msk [vmem:[#allocation2 + $0x4] sm:$0xf] %vm1046_vm14, %v1974_v56 }
 0xd25   : > { %v2597_v58 = vld [vmem:[#allocation2] sm:$0xff] }
 0xd26   : > { %2532 = vmatmul.msk.bf16.vlgmr.msrb.gmra.mxu0 %vm699_vm1, %v2597_v58 }
 0xda3   : > { %v2012_v61 = vpop.f32.mrf.mxu0 }
 0xda4   : > { %v2017_v62 = vadd.f32 %v2012_v61, %v3284_v57 }
 0xda6   : > { %v2021_v63 = vadd.f32 %v2684_v60, %v2017_v62 }
 0xda8   : > { %2023 = vst.msk [vmem:[#allocation9] sm:$0xff] %vm699_vm1, %v2021_v63 }
 0xdab   : > { %v2014_v1 = vpop.f32.mrf.mxu0 }
 0xdac   : > { %v2018_v3 = vadd.f32 %v2014_v1, %v3289_v8 }
 0xdae   : > { %v2022_v5 = vadd.f32 %v2684_v60, %v2018_v3 }
 0xdaf   : > { %v3425_v6 = vld [vmem:[#allocation9] sm:$0xff] }
 0xdb0   : > { %2024 = vst.msk [vmem:[#allocation9 + $0x8] sm:$0xff] %vm699_vm1, %v2022_v5  ;;  %v2029_v7 = vsel %vm699_vm1, %v3425_v6, 0.0 }
 0xdb1   : > { %2030 = vadd.xlane.f32.xlu2 %v2029_v7 }
 0xdb7   : > { %v3430_v2 = vld [vmem:[#allocation9 + $0x8] sm:$0xff] }
 0xdb8   : > { %v2032_v57 = vsel %vm699_vm1, %v3430_v2, 0.0 }
 0xdb9   : > { %2033 = vadd.xlane.f32.xlu1 %v2032_v57 }
 0xe24   : > { %v2031_v0 = vpop.xlane.xlu2 %2030 }
 0xe25   : > { %v2035_v10 = vmul.f32 %v2031_v0, %v3125_v12 }
 0xe27   : > { %v2037_v8 = vsub.f32 %v3425_v6, %v2035_v10 }
 0xe29   : > { %v2039_v11 = vmul.f32 %v2037_v8, %v2037_v8 }
 0xe2b   : > { %v2041_v13 = vsel %vm699_vm1, %v2039_v11, 0.0 }
 0xe2c   : > { %2042 = vadd.xlane.f32.xlu0 %v2041_v13  ;;  %v2034_v14 = vpop.xlane.xlu1 %2033 }
 0xe2d   : > { %v2036_v15 = vmul.f32 %v2034_v14, %v3125_v12 }
 0xe2f   : > { %v2038_v16 = vsub.f32 %v3430_v2, %v2036_v15 }
 0xe31   : > { %v2040_v17 = vmul.f32 %v2038_v16, %v2038_v16 }
 0xe33   : > { %v2044_v18 = vsel %vm699_vm1, %v2040_v17, 0.0 }
 0xe34   : > { %2045 = vadd.xlane.f32.xlu2 %v2044_v18 }
 0xe9f   : > { %v2043_v4 = vpop.xlane.xlu0 %2042 }
 0xea0   : > { %v2047_v20 = vmul.f32 %v2043_v4, %v3125_v12  ;;  %v2688_v4 = vld [vmem:[%s3108_s20 + $0x9] ss:$0 sm:$0xff] }
 0xea2   : > { %v2049_v21 = vadd.f32 1e-05, %v2047_v20 }
 0xea4   : > { %2763 = vrsqrt.f32 %v2049_v21  ;;  %vm2057_vm8 = vweird.f32 %v2049_v21 }
 0xea7   : > { %v2046_v9 = vpop.xlane.xlu2 %2045 }
 0xea8   : > { %v2048_v23 = vmul.f32 %v2046_v9, %v3125_v12  ;;  %v2685_v12 = vld [vmem:[%s3108_s20 + $0x7] ss:$0 sm:$0xff]  ;;  %s2932_s20 = smov 128  }
 0xeaa   : > { %v2764_v24 = vpop.eup %2763  ;;  %v2050_v25 = vadd.f32 1e-05, %v2048_v23 }
 0xeab   : > { %v2052_v26 = vmul.f32 %v2764_v24, %v2049_v21  ;;  %vm2058_vm7 = vweird.f32 %v2764_v24 }
 0xeac   : > { %2765 = vrsqrt.f32 %v2050_v25  ;;  %vm2059_vm9 = vmor %vm2057_vm8, %vm2058_vm7  ;;  %vm2067_vm11 = vweird.f32 %v2050_v25 }
 0xead   : > { %v2053_v27 = vmul.f32 %v2764_v24, %v2052_v26 }
 0xeaf   : > { %v2054_v28 = vmul.f32 0.5, %v2053_v27 }
 0xeb1   : > { %v2055_v29 = vsub.f32 1.5, %v2054_v28 }
 0xeb2   : > { %v2766_v30 = vpop.eup %2765 }
 0xeb3   : > { %v2056_v31 = vmul.f32 %v2764_v24, %v2055_v29  ;;  %v2062_v32 = vmul.f32 %v2766_v30, %v2050_v25  ;;  %vm2068_vm10 = vweird.f32 %v2766_v30 }
 0xeb4   : > { %vm2069_vm12 = vmor %vm2067_vm11, %vm2068_vm10 }
 0xeb5   : > { %v2063_v33 = vmul.f32 %v2766_v30, %v2062_v32  ;;  %v2060_v34 = vsel %vm2059_vm9, %v2764_v24, %v2056_v31 }
 0xeb6   : > { %v2071_v37 = vmul.f32 %v2060_v34, %v2037_v8 }
 0xeb7   : > { %v2064_v35 = vmul.f32 0.5, %v2063_v33 }
 0xeb8   : > { %v2074_v40 = vmul.f32 %v2685_v12, %v2071_v37 }
 0xeb9   : > { %v2065_v36 = vsub.f32 1.5, %v2064_v35 }
 0xeba   : > { %v2077_v43 = vadd.f32 %v2686_v48, %v2074_v40 }
 0xebb   : > { %v2066_v38 = vmul.f32 %v2766_v30, %v2065_v36 }
 0xebd   : > { %v2070_v39 = vsel %vm2069_vm12, %v2766_v30, %v2066_v38 }
 0xebe   : > { %v2072_v41 = vmul.f32 %v2070_v39, %v2038_v16 }
 0xec0   : > { %v2075_v42 = vmul.f32 %v2685_v12, %v2072_v41 }
 0xec2   : > { %v2078_v44 = vadd.f32 %v2686_v48, %v2075_v42 }
 0xec4   : > { %v2079_v45 = vpack.c.bf16 %v2078_v44, %v2077_v43 }
 0xec6   : > { %2541 = vmatmul.msk.bf16.vlgmr.msrb.gmra.mxu1 %vm699_vm1, %v2079_v45 }
 0xf43   : > { %v2112_v59 = vpop.f32.mrf.mxu1 }
 0xf44   : > { %v2113_v56 = vadd.f32 %v2687_v55, %v2112_v59 }
 0xf46   : > { %v2119_v58 = vmul.f32 0.044715, %v2113_v56  ;;  %v2117_v14 = vmul.f32 0.5, %v2113_v56 }
 0xf48   : > { %v2121_v60 = vmul.f32 %v2119_v58, %v2113_v56 }
 0xf4a   : > { %v2123_v61 = vmul.f32 %v2121_v60, %v2113_v56 }
 0xf4b   : > { %v2114_v62 = vpop.f32.mrf.mxu1 }
 0xf4c   : > { %v2125_v63 = vadd.f32 %v2123_v61, %v2113_v56  ;;  %v2115_v1 = vadd.f32 %v2687_v55, %v2114_v62 }
 0xf4e   : > { %v2120_v3 = vmul.f32 0.044715, %v2115_v1  ;;  %v2127_v5 = vmul.f32 0.7978846, %v2125_v63  ;;  %v2118_v15 = vmul.f32 0.5, %v2115_v1 }
 0xf50   : > { %v2122_v7 = vmul.f32 %v2120_v3, %v2115_v1  ;;  %2767 = vtanh.f32 %v2127_v5 }
 0xf52   : > { %v2124_v57 = vmul.f32 %v2122_v7, %v2115_v1 }
 0xf54   : > { %v2126_v0 = vadd.f32 %v2124_v57, %v2115_v1 }
 0xf56   : > { %v2128_v10 = vmul.f32 0.7978846, %v2126_v0  ;;  %v2768_v8 = vpop.eup %2767 }
 0xf57   : > { %v2131_v11 = vadd.f32 1.0, %v2768_v8 }
 0xf58   : > { %2769 = vtanh.f32 %v2128_v10 }
 0xf59   : > { %v2133_v17 = vmul.f32 %v2131_v11, %v2117_v14 }
 0xf5e   : > { %v2770_v13 = vpop.eup %2769 }
 0xf5f   : > { %v2132_v16 = vadd.f32 1.0, %v2770_v13 }
 0xf61   : > { %v2134_v18 = vmul.f32 %v2132_v16, %v2118_v15 }
 0xf63   : > { %v2135_v19 = vpack.c.bf16 %v2134_v18, %v2133_v17 }
 0xf65   : > { %2210 = vmatmul.bf16.vlgmr.msrb.gmra.mxu3 %v2135_v19 }
 0xfe8   : > { %v2211_v20 = vpop.f32.mrf.mxu3 }
 0xfe9   : > { %v2212_v21 = vadd.f32 %v2688_v4, %v2211_v20 }
 0xfeb   : > { %v2216_v22 = vadd.f32 %v2212_v21, %v3425_v6 }
 0xfed   : > { %2218 = vst.msk [vmem:[#allocation9] sm:$0xff] %vm699_vm1, %v2216_v22 }
 0xff0   : > { %v2213_v9 = vpop.f32.mrf.mxu3 }
 0xff1   : > { %v2214_v23 = vadd.f32 %v2688_v4, %v2213_v9 }
 0xff3   : > { %v2217_v24 = vadd.f32 %v2214_v23, %v3430_v2 }
 0xff5   : > { %2219 = vst.msk [vmem:[#allocation9 + $0x8] sm:$0xff] %vm699_vm1, %v2217_v24 }
 0xff6   : > { %2623 = dma.vmem_to_hbm [thread:$0]  (%p2642_p8), %s2226_s30, 256, %s2228_s7, [#allocation5], %s2932_s20, %s2932_s20, %s2928_s6  }
 0xff7   : > { %2902 = dma.done.wait (%p2642_p8), [#allocation5], 256  }
 0xff8   : > { %2904 = vsyncadd (%p2642_p8), [#allocation5], 4294967040 }
 0xff9 PF: > { %s27_s29 = sadd.s32 1, %s2907_s29  }
 0xffa   : > { %p24_p9 = scmp.ge.s32.totalorder %s27_s29, 4  }
 0xffc   :  { %26 = sbr.rel (!%p24_p9) target bundleno = 11 (0xb), region = 150 }
0x1001   :  { %2244 = vsyncpa [#allocation4], 1 }
0x1002   :  { %2246 = vsyncpa [#allocation4 + $0x1], 1 }
0x1003   :  { %2247 = vsyncpa [#allocation7], 1 }
0x1004   :  { %2248 = vsyncpa [#allocation5], 1 }
0x1005   :  { %2250 = vsyncpa [#allocation5 + $0x1], 1 }

</bundles_post_ra>
